<compile_context>
chip_gen: v7x
topology: tpu7x:2x2x1
jax: 0.10.0
libtpu: 0.0.40
codegen_flags: <defaults>
</compile_context>

<pallas_src>
import functools

import jax
import jax.numpy as jnp
from jax.experimental import pallas as pl
from jax.experimental.pallas import tpu as pltpu

LN_EPS = 1e-5          # torch.nn.LayerNorm default
_LANE = 128


def _round_up(x, m):
    return (x + m - 1) // m * m


def _device_kind():
    try:
        return jax.devices()[0].device_kind.lower()
    except Exception:
        return ""


def _fused_convlnorms_kernel(x_ref, w_ref, b_ref, g_ref, bt_ref, o_ref,
                             act_ref, *opt_scratch,
                             T, K, dilation, pad, n_layers,
                             c_in, c_out, c_pad):
    """Fused n_layers x (Conv1d 'same' + ReLU + LayerNorm) for one batch element.

    x_ref:   (T, c_in)                     input rows (batch dim squeezed)
    w_ref:   (n_layers, K*c_pad, c_pad)    conv weights, tap-major, zero-padded
    b_ref:   (n_layers, 1, c_pad)          conv biases      (f32, zero-padded)
    g_ref:   (n_layers, 1, c_pad)          LayerNorm gammas (f32, zero-padded)
    bt_ref:  (n_layers, 1, c_pad)          LayerNorm betas  (f32, zero-padded)
    o_ref:   (T, c_pad)                    lane-dense output rows
    act_ref: VMEM (T + 2*pad, c_pad)       padded layer-0 activations (compute dtype)
    opt_scratch: optionally one VMEM (T, K*c_pad) im2col slab (fold path)
    """
    fold_taps = len(opt_scratch) == 1
    slab_ref = opt_scratch[0] if fold_taps else None
    act_dtype = act_ref.dtype

    # ---- per-step targeted zeroing + input load -----------------------------
    # Halo rows give the conv its 'same' zero padding; stale/uninitialized
    # channel columns beyond c_in are zeroed so no garbage (possibly NaN VMEM)
    # can reach the MXU.  Both are tiny compared to a full (T+2p, c_pad) memset.
    if pad > 0:
        act_ref[0:pad, :] = jnp.zeros((pad, c_pad), act_dtype)
        act_ref[pad + T:pad + T + pad, :] = jnp.zeros((pad, c_pad), act_dtype)
    if c_pad > c_in:
        act_ref[pad:pad + T, c_in:c_pad] = jnp.zeros((T, c_pad - c_in), act_dtype)
    act_ref[pad:pad + T, 0:c_in] = x_ref[...].astype(act_dtype)

    inv_c_out = 1.0 / c_out
    col_mask = None
    if c_out < c_pad:  # hoisted out of the layer loop (broadcasts are not CSE'd)
        col_mask = (jax.lax.broadcasted_iota(jnp.int32, (1, c_pad), 1)
                    < c_out).astype(jnp.float32)

    # TODO(synk): for deep stacks switch to lax.fori_loop with dynamic w_ref[l]
    # indexing to bound vreg live ranges; n_layers is 2-3 for this module.
    for l in range(n_layers):
        if fold_taps:
            if l == 0:
                # im2col: K shifted (T, c_pad) views of the padded activations,
                # each landing in a 128-lane-aligned tap block of the slab.
                for dk in range(K):
                    slab_ref[:, dk * c_pad:(dk + 1) * c_pad] = (
                        act_ref[dk * dilation:dk * dilation + T, :])
            # For l >= 1 the slab was already filled by the previous layer's
            # direct shifted writes below (no rebuild, no act_ref round-trip).
            acc = jnp.dot(slab_ref[...], w_ref[l],
                          preferred_element_type=jnp.float32)
        else:
            # Wide channels: per-tap matmuls already feed the MXU contraction.
            acc = jnp.zeros((T, c_pad), jnp.float32)
            for dk in range(K):
                xs = act_ref[dk * dilation:dk * dilation + T, :]
                wk = w_ref[l, dk * c_pad:(dk + 1) * c_pad, :]
                acc = acc + jnp.dot(xs, wk, preferred_element_type=jnp.float32)

        # Bias + ReLU + LayerNorm epilogue in f32.  Columns >= c_out are exactly
        # zero (zero-padded weights + bias), so dividing the full-row sum by the
        # true c_out gives the exact mean; the variance masks padded columns.
        acc = jnp.maximum(acc + b_ref[l], 0.0)
        mean = jnp.sum(acc, axis=-1, keepdims=True) * inv_c_out
        centered = acc - mean
        cm = centered if col_mask is None else centered * col_mask
        var = jnp.sum(cm * cm, axis=-1, keepdims=True) * inv_c_out
        y = centered * jax.lax.rsqrt(var + LN_EPS) * g_ref[l] + bt_ref[l]
        # Padded columns of y are exactly zero (gamma/beta are zero there).
        # TODO(synk): Dropout(drop_out) omitted - identity in eval mode.

        if l == n_layers - 1:
            o_ref[...] = y.astype(o_ref.dtype)
        elif fold_taps:
            # Feed the next layer by writing y straight into the K shifted tap
            # blocks of the slab; the untouched edge rows stay zero and provide
            # the next layer's 'same' padding.
            yc = y.astype(act_dtype)
            for dk in range(K):
                off = dk * dilation - pad
                lo, s_lo = max(0, -off), max(0, off)
                n = T - abs(off)
                if n > 0:
                    slab_ref[lo:lo + n, dk * c_pad:(dk + 1) * c_pad] = (
                        yc[s_lo:s_lo + n, :])
        else:
            # Wide path: write full-width y back into the padded activation
            # buffer (padded columns of y are zero, so no stale data is left).
            act_ref[pad:pad + T, :] = y.astype(act_dtype)


def conv_lnorms_1d(x, params, *, kernel_size, dilation=1,
                   compute_dtype=jnp.float32, fold_taps=None):
    """Full ConvLNorms1d forward (dropout = identity), fused in one pallas_call.

    x: (B, T, C_in); params: list of (w (K, C_l_in, C_out), b, gamma, beta).
    compute_dtype: dtype of the MXU matmul inputs and VMEM scratches (bf16
    recommended on v6e/v7x); accumulation + LayerNorm epilogue are always f32.
    fold_taps: None = auto (generation-aware), or force the path explicitly.
    """
    assert kernel_size % 2 == 1, "'same' padding formula requires odd kernel_size"
    B, T, C_in = x.shape
    n_layers = len(params)
    K = kernel_size
    C_out = params[0][0].shape[-1]
    pad = dilation * (kernel_size - 1) // 2
    assert T > pad, "sequence length must exceed the conv half-window"

    C_pad = _round_up(max(C_in, C_out), _LANE)      # lane-dense channel width
    csize = jnp.dtype(compute_dtype).itemsize

    kind = _device_kind()
    # Per-tap contraction is C_pad; fold K taps into one matmul when it would
    # underfeed the MXU (256-wide on v6e/v7x, 128-wide on v5e and older).
    mxu_k = 128 if any(v in kind for v in ("v2", "v3", "v4", "v5")) else 256
    slab_bytes = T * K * C_pad * csize
    if fold_taps is None:
        fold_taps = (max(C_in, C_out) < mxu_k) and slab_bytes <= (24 << 20)

    # ---- pack all layers' parameters into zero-padded stacked slabs ---------
    w_list, b_list, g_list, bt_list = [], [], [], []
    expected_c_in = C_in
    for li, (w, b, gamma, beta) in enumerate(params):
        k_l, c_l_in, c_l_out = w.shape
        assert k_l == K and c_l_out == C_out and c_l_in == expected_c_in, (
            f"layer {li}: weight shape {w.shape} inconsistent with stack "
            f"(expected ({K}, {expected_c_in}, {C_out}))")
        expected_c_in = C_out
        w_pad = jnp.zeros((K, C_pad, C_pad), w.dtype).at[:, :c_l_in, :C_out].set(w)
        w_list.append(w_pad.reshape(K * C_pad, C_pad))
        b_list.append(jnp.zeros((1, C_pad), jnp.float32)
                      .at[:, :C_out].set(b.astype(jnp.float32)))
        g_list.append(jnp.zeros((1, C_pad), jnp.float32)
                      .at[:, :C_out].set(gamma.astype(jnp.float32)))
        bt_list.append(jnp.zeros((1, C_pad), jnp.float32)
                       .at[:, :C_out].set(beta.astype(jnp.float32)))
    w_all = jnp.stack(w_list).astype(compute_dtype)   # (L, K*C_pad, C_pad)
    b_all = jnp.stack(b_list)                          # (L, 1, C_pad) f32
    g_all = jnp.stack(g_list)
    bt_all = jnp.stack(bt_list)

    # ---- VMEM budget ---------------------------------------------------------
    act_bytes = (T + 2 * pad) * C_pad * csize
    x_tile = T * C_in * x.dtype.itemsize * 2           # double-buffered input
    o_tile = T * C_pad * x.dtype.itemsize * 2          # double-buffered output
    p_bytes = (int(w_all.size) * csize
               + int(b_all.size + g_all.size + bt_all.size) * 4)
    phys_vmem = (64 << 20) if "v7" in kind else (128 << 20)

    flops = 0
    c_prev = C_in
    for _ in range(n_layers):
        flops += 2 * B * T * (K * c_prev) * C_out
        c_prev = C_out
    cost = pl.CostEstimate(
        flops=int(flops),
        transcendentals=int(n_layers * B * T),
        bytes_accessed=int(x.size * x.dtype.itemsize
                           + B * T * C_pad * x.dtype.itemsize + p_bytes))

    kernel = functools.partial(
        _fused_convlnorms_kernel, T=T, K=K, dilation=dilation, pad=pad,
        n_layers=n_layers, c_in=C_in, c_out=C_out, c_pad=C_pad)

    def build_and_call(single_buffer_params):
        p_bufs = 1 if single_buffer_params else 2
        need = (act_bytes + (slab_bytes if fold_taps else 0)
                + x_tile + o_tile + p_bytes * p_bufs)
        vmem_limit = int(min(max(need * 3 // 2 + (4 << 20), 32 << 20),
                             phys_vmem - (16 << 20)))

        def param_spec(shape):
            idx_map = lambda bi: (0,) * len(shape)   # constant -> never re-DMAs
            if single_buffer_params:
                return pl.BlockSpec(shape, idx_map, pipeline_mode=pl.Buffered(1))
            return pl.BlockSpec(shape, idx_map)

        scratch_shapes = [pltpu.VMEM((T + 2 * pad, C_pad), compute_dtype)]
        if fold_taps:
            scratch_shapes.append(pltpu.VMEM((T, K * C_pad), compute_dtype))

        # TODO(synk): add a halo'd T grid axis here for very long sequences on
        # v7x so the scratches stay within the 64 MiB VMEM.
        return pl.pallas_call(
            kernel,
            out_shape=jax.ShapeDtypeStruct((B, T, C_pad), x.dtype),
            grid_spec=pltpu.PrefetchScalarGridSpec(
                num_scalar_prefetch=0,
                grid=(B,),
                in_specs=[
                    # Squeezed batch dim -> kernel sees 2-D (T, C) refs.
                    pl.BlockSpec((None, T, C_in), lambda bi: (bi, 0, 0)),
                    param_spec((n_layers, K * C_pad, C_pad)),
                    param_spec((n_layers, 1, C_pad)),
                    param_spec((n_layers, 1, C_pad)),
                    param_spec((n_layers, 1, C_pad)),
                ],
                out_specs=pl.BlockSpec((None, T, C_pad), lambda bi: (bi, 0, 0)),
                scratch_shapes=scratch_shapes),
            compiler_params=pltpu.CompilerParams(
                dimension_semantics=("parallel",),
                vmem_limit_bytes=vmem_limit),
            cost_estimate=cost,
        )(x, w_all, b_all, g_all, bt_all)

    try:
        out = build_and_call(True)       # single-buffered constant params
    except Exception:                    # conservative fallback (older runtimes)
        out = build_and_call(False)

    return out[:, :, :C_out] if C_pad != C_out else out


def init_params(key, in_channels, out_channels, kernel_size, n_layers):
    """Deterministic synthetic parameters matching the PyTorch module shapes."""
    params = []
    c_in = in_channels
    for _ in range(n_layers):
        key, k1, k2 = jax.random.split(key, 3)
        # torch Conv1d weight is (C_out, C_in, K); store tap-major (K, C_in, C_out).
        w_torch = jax.random.normal(
            k1, (out_channels, c_in, kernel_size), dtype=jnp.float32) * 0.1
        w = jnp.transpose(w_torch, (2, 1, 0))
        b = jax.random.normal(k2, (out_channels,), dtype=jnp.float32) * 0.01
        gamma = jnp.ones((out_channels,), dtype=jnp.float32)
        beta = jnp.zeros((out_channels,), dtype=jnp.float32)
        params.append((w, b, gamma, beta))
        c_in = out_channels
    return params


def _reference(x, params, *, kernel_size, dilation=1):
    """Pure f32 VPU reference (no matmul precision ambiguity)."""
    for (w, b, gamma, beta) in params:
        B, T, _ = x.shape
        K, _, C_out = w.shape
        pad = dilation * (kernel_size - 1) // 2
        xp = jnp.pad(x, ((0, 0), (pad, pad), (0, 0)))
        acc = jnp.zeros((B, T, C_out), jnp.float32)
        for dk in range(K):
            s = dk * dilation
            acc = acc + jnp.sum(xp[:, s:s + T, :, None] * w[dk][None, None, :, :],
                                axis=2)
        acc = jnp.maximum(acc + b, 0.0)
        mean = jnp.mean(acc, axis=-1, keepdims=True)
        var = jnp.mean((acc - mean) ** 2, axis=-1, keepdims=True)
        x = (acc - mean) * jax.lax.rsqrt(var + LN_EPS) * gamma + beta
    return x


if __name__ == "__main__":
    key = jax.random.PRNGKey(0)

    # --- Config 1: small shapes consistent with the module's forward ---------
    B, T, in_c, out_c, K, L = 2, 16, 4, 8, 3, 2
    key, kx, kp = jax.random.split(key, 3)
    x = jax.random.normal(kx, (B, T, in_c), dtype=jnp.float32)
    params = init_params(kp, in_c, out_c, K, L)

    out = jax.block_until_ready(conv_lnorms_1d(x, params, kernel_size=K))
    ref = _reference(x, params, kernel_size=K)
    assert out.shape == (B, T, out_c)
    assert jnp.allclose(out, ref, atol=2e-3, rtol=2e-3), "mismatch vs reference"

    # --- Config 2: C_in > C_out, dilation=2, forced wide-channel (per-tap) path
    in_c2, out_c2, K2, L2, dil2 = 12, 8, 3, 2, 2
    key, kx2, kp2 = jax.random.split(key, 3)
    x2 = jax.random.normal(kx2, (B, T, in_c2), dtype=jnp.float32)
    params2 = init_params(kp2, in_c2, out_c2, K2, L2)
    out2 = jax.block_until_ready(
        conv_lnorms_1d(x2, params2, kernel_size=K2, dilation=dil2,
                       fold_taps=False))
    ref2 = _reference(x2, params2, kernel_size=K2, dilation=dil2)
    assert out2.shape == (B, T, out_c2)
    assert jnp.allclose(out2, ref2, atol=2e-3, rtol=2e-3), "mismatch (wide path)"

    # --- bf16 MXU fast path: smoke check (LN can amplify bf16 input rounding) -
    out_bf = jax.block_until_ready(
        conv_lnorms_1d(x, params, kernel_size=K, compute_dtype=jnp.bfloat16))
    assert out_bf.shape == (B, T, out_c)
    assert bool(jnp.all(jnp.isfinite(out_bf)))

    print("KERNEL_OK")
</pallas_src>

<mosaic_0001>
module attributes {stable_mosaic.version = 11 : i64} {
  func.func @_fused_convlnorms_kernel(%arg0: i32, %arg1: memref<1x16x4xf32, #tpu.memory_space<vmem>>, %arg2: memref<2x384x128xf32, #tpu.memory_space<vmem>>, %arg3: memref<2x1x128xf32, #tpu.memory_space<vmem>>, %arg4: memref<2x1x128xf32, #tpu.memory_space<vmem>>, %arg5: memref<2x1x128xf32, #tpu.memory_space<vmem>>, %arg6: memref<1x16x128xf32, #tpu.memory_space<vmem>>, %arg7: memref<18x128xf32, #tpu.memory_space<vmem>>, %arg8: memref<16x384xf32, #tpu.memory_space<vmem>>) attributes {dimension_semantics = [#tpu.dimension_semantics<parallel>], iteration_bounds = array<i64: 2>, scalar_prefetch = 0 : i64, scratch_operands = 2 : i64, tpu.core_type = #tpu.core_type<tc>, window_params = [{transform_indices = @transform_0, window_bounds = array<i64: 1, 16, 4>}, {pipeline_mode = #tpu.pipeline_mode<synchronous>, transform_indices = @transform_1, window_bounds = array<i64: 2, 384, 128>}, {pipeline_mode = #tpu.pipeline_mode<synchronous>, transform_indices = @transform_2, window_bounds = array<i64: 2, 1, 128>}, {pipeline_mode = #tpu.pipeline_mode<synchronous>, transform_indices = @transform_3, window_bounds = array<i64: 2, 1, 128>}, {pipeline_mode = #tpu.pipeline_mode<synchronous>, transform_indices = @transform_4, window_bounds = array<i64: 2, 1, 128>}, {transform_indices = @transform_5, window_bounds = array<i64: 1, 16, 128>}]} {
    %cst = arith.constant 0.000000e+00 : f32
    %0 = vector.broadcast %cst : f32 to vector<1x128xf32>
    %c0 = arith.constant 0 : index
    %c0_0 = arith.constant 0 : index
    %1 = vector.load %arg7[%c0, %c0_0] : memref<18x128xf32, #tpu.memory_space<vmem>>, vector<1x128xf32>
    tpu.vector_store %arg7[%c0, %c0_0], %0 {strides = array<i32>} : memref<18x128xf32, #tpu.memory_space<vmem>>, vector<1x128xf32>,
    %cst_1 = arith.constant 0.000000e+00 : f32
    %2 = vector.broadcast %cst_1 : f32 to vector<1x128xf32>
    %c17 = arith.constant 17 : index
    %c0_2 = arith.constant 0 : index
    %3 = vector.load %arg7[%c17, %c0_2] : memref<18x128xf32, #tpu.memory_space<vmem>>, vector<1x128xf32>
    tpu.vector_store %arg7[%c17, %c0_2], %2 {strides = array<i32>} : memref<18x128xf32, #tpu.memory_space<vmem>>, vector<1x128xf32>,
    %cst_3 = arith.constant 0.000000e+00 : f32
    %4 = vector.broadcast %cst_3 : f32 to vector<16x124xf32>
    %c1 = arith.constant 1 : index
    %c4 = arith.constant 4 : index
    %5 = vector.load %arg7[%c1, %c4] : memref<18x128xf32, #tpu.memory_space<vmem>>, vector<16x124xf32>
    tpu.vector_store %arg7[%c1, %c4], %4 {strides = array<i32>} : memref<18x128xf32, #tpu.memory_space<vmem>>, vector<16x124xf32>,
    %c0_4 = arith.constant 0 : index
    %c0_5 = arith.constant 0 : index
    %c0_6 = arith.constant 0 : index
    %6 = vector.load %arg1[%c0_4, %c0_5, %c0_6] : memref<1x16x4xf32, #tpu.memory_space<vmem>>, vector<1x16x4xf32>
    %7 = vector.shape_cast %6 : vector<1x16x4xf32> to vector<16x4xf32>
    %c1_7 = arith.constant 1 : index
    %c0_8 = arith.constant 0 : index
    %8 = vector.load %arg7[%c1_7, %c0_8] : memref<18x128xf32, #tpu.memory_space<vmem>>, vector<16x4xf32>
    tpu.vector_store %arg7[%c1_7, %c0_8], %7 {strides = array<i32>} : memref<18x128xf32, #tpu.memory_space<vmem>>, vector<16x4xf32>,
    %9 = tpu.iota {dimensions = array<i32: 1>} : vector<1x128xi32>
    %c8_i32 = arith.constant 8 : i32
    %10 = vector.broadcast %c8_i32 : i32 to vector<1x128xi32>
    %11 = arith.cmpi slt, %9, %10 : vector<1x128xi32>
    %12 = arith.extui %11 : vector<1x128xi1> to vector<1x128xi32>
    %13 = arith.sitofp %12 : vector<1x128xi32> to vector<1x128xf32>
    %c0_9 = arith.constant 0 : index
    %c0_10 = arith.constant 0 : index
    %14 = vector.load %arg7[%c0_9, %c0_10] : memref<18x128xf32, #tpu.memory_space<vmem>>, vector<16x128xf32>
    %c0_11 = arith.constant 0 : index
    %c0_12 = arith.constant 0 : index
    %15 = vector.load %arg8[%c0_11, %c0_12] : memref<16x384xf32, #tpu.memory_space<vmem>>, vector<16x128xf32>
    tpu.vector_store %arg8[%c0_11, %c0_12], %14 {strides = array<i32>} : memref<16x384xf32, #tpu.memory_space<vmem>>, vector<16x128xf32>,
    %c1_13 = arith.constant 1 : index
    %c0_14 = arith.constant 0 : index
    %16 = vector.load %arg7[%c1_13, %c0_14] : memref<18x128xf32, #tpu.memory_space<vmem>>, vector<16x128xf32>
    %c0_15 = arith.constant 0 : index
    %c128 = arith.constant 128 : index
    %17 = vector.load %arg8[%c0_15, %c128] : memref<16x384xf32, #tpu.memory_space<vmem>>, vector<16x128xf32>
    tpu.vector_store %arg8[%c0_15, %c128], %16 {strides = array<i32>} : memref<16x384xf32, #tpu.memory_space<vmem>>, vector<16x128xf32>,
    %c2 = arith.constant 2 : index
    %c0_16 = arith.constant 0 : index
    %18 = vector.load %arg7[%c2, %c0_16] : memref<18x128xf32, #tpu.memory_space<vmem>>, vector<16x128xf32>
    %c0_17 = arith.constant 0 : index
    %c256 = arith.constant 256 : index
    %19 = vector.load %arg8[%c0_17, %c256] : memref<16x384xf32, #tpu.memory_space<vmem>>, vector<16x128xf32>
    tpu.vector_store %arg8[%c0_17, %c256], %18 {strides = array<i32>} : memref<16x384xf32, #tpu.memory_space<vmem>>, vector<16x128xf32>,
    %c0_18 = arith.constant 0 : index
    %c0_19 = arith.constant 0 : index
    %20 = vector.load %arg8[%c0_18, %c0_19] : memref<16x384xf32, #tpu.memory_space<vmem>>, vector<16x384xf32>
    %c0_20 = arith.constant 0 : index
    %c0_21 = arith.constant 0 : index
    %c0_22 = arith.constant 0 : index
    %21 = vector.load %arg2[%c0_20, %c0_21, %c0_22] : memref<2x384x128xf32, #tpu.memory_space<vmem>>, vector<1x384x128xf32>
    %22 = vector.shape_cast %21 : vector<1x384x128xf32> to vector<384x128xf32>
    %cst_23 = arith.constant dense<0.000000e+00> : vector<16x128xf32>
    %23 = tpu.matmul %20, %22, %cst_23 {dimension_numbers = #tpu.dot_dimension_numbers<[1], [0], [0], [1], [0, 0, 1, 1], [], []>} : vector<16x384xf32>, vector<384x128xf32>, vector<16x128xf32> -> vector<16x128xf32>
    %c0_24 = arith.constant 0 : index
    %c0_25 = arith.constant 0 : index
    %c0_26 = arith.constant 0 : index
    %24 = vector.load %arg3[%c0_24, %c0_25, %c0_26] : memref<2x1x128xf32, #tpu.memory_space<vmem>>, vector<1x1x128xf32>
    %25 = vector.shape_cast %24 : vector<1x1x128xf32> to vector<1x128xf32>
    %26 = vector.broadcast %25 : vector<1x128xf32> to vector<16x128xf32>
    %27 = arith.addf %23, %26 : vector<16x128xf32>
    %cst_27 = arith.constant 0.000000e+00 : f32
    %28 = vector.broadcast %cst_27 : f32 to vector<16x128xf32>
    %29 = arith.maximumf %27, %28 : vector<16x128xf32>
    %cst_28 = arith.constant dense<0.000000e+00> : vector<16xf32>
    %30 = vector.multi_reduction <add>, %29, %cst_28 [1] : vector<16x128xf32> to vector<16xf32>
    %31 = vector.shape_cast %30 : vector<16xf32> to vector<16x1xf32>
    %cst_29 = arith.constant 1.250000e-01 : f32
    %32 = vector.broadcast %cst_29 : f32 to vector<16x1xf32>
    %33 = arith.mulf %31, %32 : vector<16x1xf32>
    %34 = vector.broadcast %33 : vector<16x1xf32> to vector<16x128xf32>
    %35 = arith.subf %29, %34 : vector<16x128xf32>
    %36 = vector.broadcast %13 : vector<1x128xf32> to vector<16x128xf32>
    %37 = arith.mulf %35, %36 : vector<16x128xf32>
    %38 = arith.mulf %37, %37 : vector<16x128xf32>
    %cst_30 = arith.constant dense<0.000000e+00> : vector<16xf32>
    %39 = vector.multi_reduction <add>, %38, %cst_30 [1] : vector<16x128xf32> to vector<16xf32>
    %40 = vector.shape_cast %39 : vector<16xf32> to vector<16x1xf32>
    %cst_31 = arith.constant 1.250000e-01 : f32
    %41 = vector.broadcast %cst_31 : f32 to vector<16x1xf32>
    %42 = arith.mulf %40, %41 : vector<16x1xf32>
    %cst_32 = arith.constant 9.99999974E-6 : f32
    %43 = vector.broadcast %cst_32 : f32 to vector<16x1xf32>
    %44 = arith.addf %42, %43 : vector<16x1xf32>
    %45 = math.rsqrt %44 : vector<16x1xf32>
    %46 = vector.broadcast %45 : vector<16x1xf32> to vector<16x128xf32>
    %47 = arith.mulf %35, %46 : vector<16x128xf32>
    %c0_33 = arith.constant 0 : index
    %c0_34 = arith.constant 0 : index
    %c0_35 = arith.constant 0 : index
    %48 = vector.load %arg4[%c0_33, %c0_34, %c0_35] : memref<2x1x128xf32, #tpu.memory_space<vmem>>, vector<1x1x128xf32>
    %49 = vector.shape_cast %48 : vector<1x1x128xf32> to vector<1x128xf32>
    %50 = vector.broadcast %49 : vector<1x128xf32> to vector<16x128xf32>
    %51 = arith.mulf %47, %50 : vector<16x128xf32>
    %c0_36 = arith.constant 0 : index
    %c0_37 = arith.constant 0 : index
    %c0_38 = arith.constant 0 : index
    %52 = vector.load %arg5[%c0_36, %c0_37, %c0_38] : memref<2x1x128xf32, #tpu.memory_space<vmem>>, vector<1x1x128xf32>
    %53 = vector.shape_cast %52 : vector<1x1x128xf32> to vector<1x128xf32>
    %54 = vector.broadcast %53 : vector<1x128xf32> to vector<16x128xf32>
    %55 = arith.addf %51, %54 : vector<16x128xf32>
    %56 = vector.extract_strided_slice %55 {offsets = [0, 0], sizes = [15, 128], strides = [1, 1]} : vector<16x128xf32> to vector<15x128xf32>
    %c1_39 = arith.constant 1 : index
    %c0_40 = arith.constant 0 : index
    %57 = vector.load %arg8[%c1_39, %c0_40] : memref<16x384xf32, #tpu.memory_space<vmem>>, vector<15x128xf32>
    tpu.vector_store %arg8[%c1_39, %c0_40], %56 {strides = array<i32>} : memref<16x384xf32, #tpu.memory_space<vmem>>, vector<15x128xf32>,
    %c0_41 = arith.constant 0 : index
    %c128_42 = arith.constant 128 : index
    %58 = vector.load %arg8[%c0_41, %c128_42] : memref<16x384xf32, #tpu.memory_space<vmem>>, vector<16x128xf32>
    tpu.vector_store %arg8[%c0_41, %c128_42], %55 {strides = array<i32>} : memref<16x384xf32, #tpu.memory_space<vmem>>, vector<16x128xf32>,
    %59 = vector.extract_strided_slice %55 {offsets = [1, 0], sizes = [15, 128], strides = [1, 1]} : vector<16x128xf32> to vector<15x128xf32>
    %c0_43 = arith.constant 0 : index
    %c256_44 = arith.constant 256 : index
    %60 = vector.load %arg8[%c0_43, %c256_44] : memref<16x384xf32, #tpu.memory_space<vmem>>, vector<15x128xf32>
    tpu.vector_store %arg8[%c0_43, %c256_44], %59 {strides = array<i32>} : memref<16x384xf32, #tpu.memory_space<vmem>>, vector<15x128xf32>,
    %c0_45 = arith.constant 0 : index
    %c0_46 = arith.constant 0 : index
    %61 = vector.load %arg8[%c0_45, %c0_46] : memref<16x384xf32, #tpu.memory_space<vmem>>, vector<16x384xf32>
    %c1_47 = arith.constant 1 : index
    %c0_48 = arith.constant 0 : index
    %c0_49 = arith.constant 0 : index
    %62 = vector.load %arg2[%c1_47, %c0_48, %c0_49] : memref<2x384x128xf32, #tpu.memory_space<vmem>>, vector<1x384x128xf32>
    %63 = vector.shape_cast %62 : vector<1x384x128xf32> to vector<384x128xf32>
    %cst_50 = arith.constant dense<0.000000e+00> : vector<16x128xf32>
    %64 = tpu.matmul %61, %63, %cst_50 {dimension_numbers = #tpu.dot_dimension_numbers<[1], [0], [0], [1], [0, 0, 1, 1], [], []>} : vector<16x384xf32>, vector<384x128xf32>, vector<16x128xf32> -> vector<16x128xf32>
    %c1_51 = arith.constant 1 : index
    %c0_52 = arith.constant 0 : index
    %c0_53 = arith.constant 0 : index
    %65 = vector.load %arg3[%c1_51, %c0_52, %c0_53] : memref<2x1x128xf32, #tpu.memory_space<vmem>>, vector<1x1x128xf32>
    %66 = vector.shape_cast %65 : vector<1x1x128xf32> to vector<1x128xf32>
    %67 = vector.broadcast %66 : vector<1x128xf32> to vector<16x128xf32>
    %68 = arith.addf %64, %67 : vector<16x128xf32>
    %cst_54 = arith.constant 0.000000e+00 : f32
    %69 = vector.broadcast %cst_54 : f32 to vector<16x128xf32>
    %70 = arith.maximumf %68, %69 : vector<16x128xf32>
    %cst_55 = arith.constant dense<0.000000e+00> : vector<16xf32>
    %71 = vector.multi_reduction <add>, %70, %cst_55 [1] : vector<16x128xf32> to vector<16xf32>
    %72 = vector.shape_cast %71 : vector<16xf32> to vector<16x1xf32>
    %cst_56 = arith.constant 1.250000e-01 : f32
    %73 = vector.broadcast %cst_56 : f32 to vector<16x1xf32>
    %74 = arith.mulf %72, %73 : vector<16x1xf32>
    %75 = vector.broadcast %74 : vector<16x1xf32> to vector<16x128xf32>
    %76 = arith.subf %70, %75 : vector<16x128xf32>
    %77 = vector.broadcast %13 : vector<1x128xf32> to vector<16x128xf32>
    %78 = arith.mulf %76, %77 : vector<16x128xf32>
    %79 = arith.mulf %78, %78 : vector<16x128xf32>
    %cst_57 = arith.constant dense<0.000000e+00> : vector<16xf32>
    %80 = vector.multi_reduction <add>, %79, %cst_57 [1] : vector<16x128xf32> to vector<16xf32>
    %81 = vector.shape_cast %80 : vector<16xf32> to vector<16x1xf32>
    %cst_58 = arith.constant 1.250000e-01 : f32
    %82 = vector.broadcast %cst_58 : f32 to vector<16x1xf32>
    %83 = arith.mulf %81, %82 : vector<16x1xf32>
    %cst_59 = arith.constant 9.99999974E-6 : f32
    %84 = vector.broadcast %cst_59 : f32 to vector<16x1xf32>
    %85 = arith.addf %83, %84 : vector<16x1xf32>
    %86 = math.rsqrt %85 : vector<16x1xf32>
    %87 = vector.broadcast %86 : vector<16x1xf32> to vector<16x128xf32>
    %88 = arith.mulf %76, %87 : vector<16x128xf32>
    %c1_60 = arith.constant 1 : index
    %c0_61 = arith.constant 0 : index
    %c0_62 = arith.constant 0 : index
    %89 = vector.load %arg4[%c1_60, %c0_61, %c0_62] : memref<2x1x128xf32, #tpu.memory_space<vmem>>, vector<1x1x128xf32>
    %90 = vector.shape_cast %89 : vector<1x1x128xf32> to vector<1x128xf32>
    %91 = vector.broadcast %90 : vector<1x128xf32> to vector<16x128xf32>
    %92 = arith.mulf %88, %91 : vector<16x128xf32>
    %c1_63 = arith.constant 1 : index
    %c0_64 = arith.constant 0 : index
    %c0_65 = arith.constant 0 : index
    %93 = vector.load %arg5[%c1_63, %c0_64, %c0_65] : memref<2x1x128xf32, #tpu.memory_space<vmem>>, vector<1x1x128xf32>
    %94 = vector.shape_cast %93 : vector<1x1x128xf32> to vector<1x128xf32>
    %95 = vector.broadcast %94 : vector<1x128xf32> to vector<16x128xf32>
    %96 = arith.addf %92, %95 : vector<16x128xf32>
    %c0_66 = arith.constant 0 : index
    %c0_67 = arith.constant 0 : index
    %c0_68 = arith.constant 0 : index
    %97 = vector.load %arg6[%c0_66, %c0_67, %c0_68] : memref<1x16x128xf32, #tpu.memory_space<vmem>>, vector<1x16x128xf32>
    %98 = vector.shape_cast %97 : vector<1x16x128xf32> to vector<16x128xf32>
    %99 = vector.shape_cast %96 : vector<16x128xf32> to vector<1x16x128xf32>
    tpu.vector_store %arg6[%c0_66, %c0_67, %c0_68], %99 {strides = array<i32>} : memref<1x16x128xf32, #tpu.memory_space<vmem>>, vector<1x16x128xf32>,
    return
  }
  func.func @transform_0(%arg0: i32) -> (i32, i32, i32) {
    %c0_i32 = arith.constant 0 : i32
    %c0_i32_0 = arith.constant 0 : i32
    %c0_i32_1 = arith.constant 0 : i32
    return %arg0, %c0_i32, %c0_i32_0 : i32, i32, i32
  }
  func.func @transform_1(%arg0: i32) -> (i32, i32, i32) {
    %c0_i32 = arith.constant 0 : i32
    %c0_i32_0 = arith.constant 0 : i32
    %c0_i32_1 = arith.constant 0 : i32
    %c0_i32_2 = arith.constant 0 : i32
    return %c0_i32, %c0_i32_0, %c0_i32_1 : i32, i32, i32
  }
  func.func @transform_2(%arg0: i32) -> (i32, i32, i32) {
    %c0_i32 = arith.constant 0 : i32
    %c0_i32_0 = arith.constant 0 : i32
    %c0_i32_1 = arith.constant 0 : i32
    %c0_i32_2 = arith.constant 0 : i32
    return %c0_i32, %c0_i32_0, %c0_i32_1 : i32, i32, i32
  }
  func.func @transform_3(%arg0: i32) -> (i32, i32, i32) {
    %c0_i32 = arith.constant 0 : i32
    %c0_i32_0 = arith.constant 0 : i32
    %c0_i32_1 = arith.constant 0 : i32
    %c0_i32_2 = arith.constant 0 : i32
    return %c0_i32, %c0_i32_0, %c0_i32_1 : i32, i32, i32
  }
  func.func @transform_4(%arg0: i32) -> (i32, i32, i32) {
    %c0_i32 = arith.constant 0 : i32
    %c0_i32_0 = arith.constant 0 : i32
    %c0_i32_1 = arith.constant 0 : i32
    %c0_i32_2 = arith.constant 0 : i32
    return %c0_i32, %c0_i32_0, %c0_i32_1 : i32, i32, i32
  }
  func.func @transform_5(%arg0: i32) -> (i32, i32, i32) {
    %c0_i32 = arith.constant 0 : i32
    %c0_i32_0 = arith.constant 0 : i32
    %c0_i32_1 = arith.constant 0 : i32
    return %arg0, %c0_i32, %c0_i32_0 : i32, i32, i32
  }
}

module attributes {stable_mosaic.version = 11 : i64} {
  func.func @_fused_convlnorms_kernel(%arg0: i32, %arg1: memref<1x16x4xf32, #tpu.memory_space<vmem>>, %arg2: memref<2x384x128xf32, #tpu.memory_space<vmem>>, %arg3: memref<2x1x128xf32, #tpu.memory_space<vmem>>, %arg4: memref<2x1x128xf32, #tpu.memory_space<vmem>>, %arg5: memref<2x1x128xf32, #tpu.memory_space<vmem>>, %arg6: memref<1x16x128xf32, #tpu.memory_space<vmem>>, %arg7: memref<18x128xf32, #tpu.memory_space<vmem>>, %arg8: memref<16x384xf32, #tpu.memory_space<vmem>>) attributes {dimension_semantics = [#tpu.dimension_semantics<parallel>], iteration_bounds = array<i64: 2>, scalar_prefetch = 0 : i64, scratch_operands = 2 : i64, tpu.core_type = #tpu.core_type<tc>, window_params = [{transform_indices = @transform_0, window_bounds = array<i64: 1, 16, 4>}, {pipeline_mode = #tpu.pipeline_mode<synchronous>, transform_indices = @transform_1, window_bounds = array<i64: 2, 384, 128>}, {pipeline_mode = #tpu.pipeline_mode<synchronous>, transform_indices = @transform_2, window_bounds = array<i64: 2, 1, 128>}, {pipeline_mode = #tpu.pipeline_mode<synchronous>, transform_indices = @transform_3, window_bounds = array<i64: 2, 1, 128>}, {pipeline_mode = #tpu.pipeline_mode<synchronous>, transform_indices = @transform_4, window_bounds = array<i64: 2, 1, 128>}, {transform_indices = @transform_5, window_bounds = array<i64: 1, 16, 128>}]} {
    %cst = arith.constant 0.000000e+00 : f32
    %0 = vector.broadcast %cst : f32 to vector<1x128xf32>
    %c0 = arith.constant 0 : index
    %c0_0 = arith.constant 0 : index
    %1 = vector.load %arg7[%c0, %c0_0] : memref<18x128xf32, #tpu.memory_space<vmem>>, vector<1x128xf32>
    tpu.vector_store %arg7[%c0, %c0_0], %0 {strides = array<i32>} : memref<18x128xf32, #tpu.memory_space<vmem>>, vector<1x128xf32>,
    %cst_1 = arith.constant 0.000000e+00 : f32
    %2 = vector.broadcast %cst_1 : f32 to vector<1x128xf32>
    %c17 = arith.constant 17 : index
    %c0_2 = arith.constant 0 : index
    %3 = vector.load %arg7[%c17, %c0_2] : memref<18x128xf32, #tpu.memory_space<vmem>>, vector<1x128xf32>
    tpu.vector_store %arg7[%c17, %c0_2], %2 {strides = array<i32>} : memref<18x128xf32, #tpu.memory_space<vmem>>, vector<1x128xf32>,
    %cst_3 = arith.constant 0.000000e+00 : f32
    %4 = vector.broadcast %cst_3 : f32 to vector<16x124xf32>
    %c1 = arith.constant 1 : index
    %c4 = arith.constant 4 : index
    %5 = vector.load %arg7[%c1, %c4] : memref<18x128xf32, #tpu.memory_space<vmem>>, vector<16x124xf32>
    tpu.vector_store %arg7[%c1, %c4], %4 {strides = array<i32>} : memref<18x128xf32, #tpu.memory_space<vmem>>, vector<16x124xf32>,
    %c0_4 = arith.constant 0 : index
    %c0_5 = arith.constant 0 : index
    %c0_6 = arith.constant 0 : index
    %6 = vector.load %arg1[%c0_4, %c0_5, %c0_6] : memref<1x16x4xf32, #tpu.memory_space<vmem>>, vector<1x16x4xf32>
    %7 = vector.shape_cast %6 : vector<1x16x4xf32> to vector<16x4xf32>
    %c1_7 = arith.constant 1 : index
    %c0_8 = arith.constant 0 : index
    %8 = vector.load %arg7[%c1_7, %c0_8] : memref<18x128xf32, #tpu.memory_space<vmem>>, vector<16x4xf32>
    tpu.vector_store %arg7[%c1_7, %c0_8], %7 {strides = array<i32>} : memref<18x128xf32, #tpu.memory_space<vmem>>, vector<16x4xf32>,
    %9 = tpu.iota {dimensions = array<i32: 1>} : vector<1x128xi32>
    %c8_i32 = arith.constant 8 : i32
    %10 = vector.broadcast %c8_i32 : i32 to vector<1x128xi32>
    %11 = arith.cmpi slt, %9, %10 : vector<1x128xi32>
    %12 = arith.extui %11 : vector<1x128xi1> to vector<1x128xi32>
    %13 = arith.sitofp %12 : vector<1x128xi32> to vector<1x128xf32>
    %c0_9 = arith.constant 0 : index
    %c0_10 = arith.constant 0 : index
    %14 = vector.load %arg7[%c0_9, %c0_10] : memref<18x128xf32, #tpu.memory_space<vmem>>, vector<16x128xf32>
    %c0_11 = arith.constant 0 : index
    %c0_12 = arith.constant 0 : index
    %15 = vector.load %arg8[%c0_11, %c0_12] : memref<16x384xf32, #tpu.memory_space<vmem>>, vector<16x128xf32>
    tpu.vector_store %arg8[%c0_11, %c0_12], %14 {strides = array<i32>} : memref<16x384xf32, #tpu.memory_space<vmem>>, vector<16x128xf32>,
    %c1_13 = arith.constant 1 : index
    %c0_14 = arith.constant 0 : index
    %16 = vector.load %arg7[%c1_13, %c0_14] : memref<18x128xf32, #tpu.memory_space<vmem>>, vector<16x128xf32>
    %c0_15 = arith.constant 0 : index
    %c128 = arith.constant 128 : index
    %17 = vector.load %arg8[%c0_15, %c128] : memref<16x384xf32, #tpu.memory_space<vmem>>, vector<16x128xf32>
    tpu.vector_store %arg8[%c0_15, %c128], %16 {strides = array<i32>} : memref<16x384xf32, #tpu.memory_space<vmem>>, vector<16x128xf32>,
    %c2 = arith.constant 2 : index
    %c0_16 = arith.constant 0 : index
    %18 = vector.load %arg7[%c2, %c0_16] : memref<18x128xf32, #tpu.memory_space<vmem>>, vector<16x128xf32>
    %c0_17 = arith.constant 0 : index
    %c256 = arith.constant 256 : index
    %19 = vector.load %arg8[%c0_17, %c256] : memref<16x384xf32, #tpu.memory_space<vmem>>, vector<16x128xf32>
    tpu.vector_store %arg8[%c0_17, %c256], %18 {strides = array<i32>} : memref<16x384xf32, #tpu.memory_space<vmem>>, vector<16x128xf32>,
    %c0_18 = arith.constant 0 : index
    %c0_19 = arith.constant 0 : index
    %20 = vector.load %arg8[%c0_18, %c0_19] : memref<16x384xf32, #tpu.memory_space<vmem>>, vector<16x384xf32>
    %c0_20 = arith.constant 0 : index
    %c0_21 = arith.constant 0 : index
    %c0_22 = arith.constant 0 : index
    %21 = vector.load %arg2[%c0_20, %c0_21, %c0_22] : memref<2x384x128xf32, #tpu.memory_space<vmem>>, vector<1x384x128xf32>
    %22 = vector.shape_cast %21 : vector<1x384x128xf32> to vector<384x128xf32>
    %cst_23 = arith.constant dense<0.000000e+00> : vector<16x128xf32>
    %23 = tpu.matmul %20, %22, %cst_23 {dimension_numbers = #tpu.dot_dimension_numbers<[1], [0], [0], [1], [0, 0, 1, 1], [], []>} : vector<16x384xf32>, vector<384x128xf32>, vector<16x128xf32> -> vector<16x128xf32>
    %c0_24 = arith.constant 0 : index
    %c0_25 = arith.constant 0 : index
    %c0_26 = arith.constant 0 : index
    %24 = vector.load %arg3[%c0_24, %c0_25, %c0_26] : memref<2x1x128xf32, #tpu.memory_space<vmem>>, vector<1x1x128xf32>
    %25 = vector.shape_cast %24 : vector<1x1x128xf32> to vector<1x128xf32>
    %26 = vector.broadcast %25 : vector<1x128xf32> to vector<16x128xf32>
    %27 = arith.addf %23, %26 : vector<16x128xf32>
    %cst_27 = arith.constant 0.000000e+00 : f32
    %28 = vector.broadcast %cst_27 : f32 to vector<16x128xf32>
    %29 = arith.maximumf %27, %28 : vector<16x128xf32>
    %cst_28 = arith.constant dense<0.000000e+00> : vector<16xf32>
    %30 = vector.multi_reduction <add>, %29, %cst_28 [1] : vector<16x128xf32> to vector<16xf32>
    %31 = vector.shape_cast %30 : vector<16xf32> to vector<16x1xf32>
    %cst_29 = arith.constant 1.250000e-01 : f32
    %32 = vector.broadcast %cst_29 : f32 to vector<16x1xf32>
    %33 = arith.mulf %31, %32 : vector<16x1xf32>
    %34 = vector.broadcast %33 : vector<16x1xf32> to vector<16x128xf32>
    %35 = arith.subf %29, %34 : vector<16x128xf32>
    %36 = vector.broadcast %13 : vector<1x128xf32> to vector<16x128xf32>
    %37 = arith.mulf %35, %36 : vector<16x128xf32>
    %38 = arith.mulf %37, %37 : vector<16x128xf32>
    %cst_30 = arith.constant dense<0.000000e+00> : vector<16xf32>
    %39 = vector.multi_reduction <add>, %38, %cst_30 [1] : vector<16x128xf32> to vector<16xf32>
    %40 = vector.shape_cast %39 : vector<16xf32> to vector<16x1xf32>
    %cst_31 = arith.constant 1.250000e-01 : f32
    %41 = vector.broadcast %cst_31 : f32 to vector<16x1xf32>
    %42 = arith.mulf %40, %41 : vector<16x1xf32>
    %cst_32 = arith.constant 9.99999974E-6 : f32
    %43 = vector.broadcast %cst_32 : f32 to vector<16x1xf32>
    %44 = arith.addf %42, %43 : vector<16x1xf32>
    %45 = math.rsqrt %44 : vector<16x1xf32>
    %46 = vector.broadcast %45 : vector<16x1xf32> to vector<16x128xf32>
    %47 = arith.mulf %35, %46 : vector<16x128xf32>
    %c0_33 = arith.constant 0 : index
    %c0_34 = arith.constant 0 : index
    %c0_35 = arith.constant 0 : index
    %48 = vector.load %arg4[%c0_33, %c0_34, %c0_35] : memref<2x1x128xf32, #tpu.memory_space<vmem>>, vector<1x1x128xf32>
    %49 = vector.shape_cast %48 : vector<1x1x128xf32> to vector<1x128xf32>
    %50 = vector.broadcast %49 : vector<1x128xf32> to vector<16x128xf32>
    %51 = arith.mulf %47, %50 : vector<16x128xf32>
    %c0_36 = arith.constant 0 : index
    %c0_37 = arith.constant 0 : index
    %c0_38 = arith.constant 0 : index
    %52 = vector.load %arg5[%c0_36, %c0_37, %c0_38] : memref<2x1x128xf32, #tpu.memory_space<vmem>>, vector<1x1x128xf32>
    %53 = vector.shape_cast %52 : vector<1x1x128xf32> to vector<1x128xf32>
    %54 = vector.broadcast %53 : vector<1x128xf32> to vector<16x128xf32>
    %55 = arith.addf %51, %54 : vector<16x128xf32>
    %56 = vector.extract_strided_slice %55 {offsets = [0, 0], sizes = [15, 128], strides = [1, 1]} : vector<16x128xf32> to vector<15x128xf32>
    %c1_39 = arith.constant 1 : index
    %c0_40 = arith.constant 0 : index
    %57 = vector.load %arg8[%c1_39, %c0_40] : memref<16x384xf32, #tpu.memory_space<vmem>>, vector<15x128xf32>
    tpu.vector_store %arg8[%c1_39, %c0_40], %56 {strides = array<i32>} : memref<16x384xf32, #tpu.memory_space<vmem>>, vector<15x128xf32>,
    %c0_41 = arith.constant 0 : index
    %c128_42 = arith.constant 128 : index
    %58 = vector.load %arg8[%c0_41, %c128_42] : memref<16x384xf32, #tpu.memory_space<vmem>>, vector<16x128xf32>
    tpu.vector_store %arg8[%c0_41, %c128_42], %55 {strides = array<i32>} : memref<16x384xf32, #tpu.memory_space<vmem>>, vector<16x128xf32>,
    %59 = vector.extract_strided_slice %55 {offsets = [1, 0], sizes = [15, 128], strides = [1, 1]} : vector<16x128xf32> to vector<15x128xf32>
    %c0_43 = arith.constant 0 : index
    %c256_44 = arith.constant 256 : index
    %60 = vector.load %arg8[%c0_43, %c256_44] : memref<16x384xf32, #tpu.memory_space<vmem>>, vector<15x128xf32>
    tpu.vector_store %arg8[%c0_43, %c256_44], %59 {strides = array<i32>} : memref<16x384xf32, #tpu.memory_space<vmem>>, vector<15x128xf32>,
    %c0_45 = arith.constant 0 : index
    %c0_46 = arith.constant 0 : index
    %61 = vector.load %arg8[%c0_45, %c0_46] : memref<16x384xf32, #tpu.memory_space<vmem>>, vector<16x384xf32>
    %c1_47 = arith.constant 1 : index
    %c0_48 = arith.constant 0 : index
    %c0_49 = arith.constant 0 : index
    %62 = vector.load %arg2[%c1_47, %c0_48, %c0_49] : memref<2x384x128xf32, #tpu.memory_space<vmem>>, vector<1x384x128xf32>
    %63 = vector.shape_cast %62 : vector<1x384x128xf32> to vector<384x128xf32>
    %cst_50 = arith.constant dense<0.000000e+00> : vector<16x128xf32>
    %64 = tpu.matmul %61, %63, %cst_50 {dimension_numbers = #tpu.dot_dimension_numbers<[1], [0], [0], [1], [0, 0, 1, 1], [], []>} : vector<16x384xf32>, vector<384x128xf32>, vector<16x128xf32> -> vector<16x128xf32>
    %c1_51 = arith.constant 1 : index
    %c0_52 = arith.constant 0 : index
    %c0_53 = arith.constant 0 : index
    %65 = vector.load %arg3[%c1_51, %c0_52, %c0_53] : memref<2x1x128xf32, #tpu.memory_space<vmem>>, vector<1x1x128xf32>
    %66 = vector.shape_cast %65 : vector<1x1x128xf32> to vector<1x128xf32>
    %67 = vector.broadcast %66 : vector<1x128xf32> to vector<16x128xf32>
    %68 = arith.addf %64, %67 : vector<16x128xf32>
    %cst_54 = arith.constant 0.000000e+00 : f32
    %69 = vector.broadcast %cst_54 : f32 to vector<16x128xf32>
    %70 = arith.maximumf %68, %69 : vector<16x128xf32>
    %cst_55 = arith.constant dense<0.000000e+00> : vector<16xf32>
    %71 = vector.multi_reduction <add>, %70, %cst_55 [1] : vector<16x128xf32> to vector<16xf32>
    %72 = vector.shape_cast %71 : vector<16xf32> to vector<16x1xf32>
    %cst_56 = arith.constant 1.250000e-01 : f32
    %73 = vector.broadcast %cst_56 : f32 to vector<16x1xf32>
    %74 = arith.mulf %72, %73 : vector<16x1xf32>
    %75 = vector.broadcast %74 : vector<16x1xf32> to vector<16x128xf32>
    %76 = arith.subf %70, %75 : vector<16x128xf32>
    %77 = vector.broadcast %13 : vector<1x128xf32> to vector<16x128xf32>
    %78 = arith.mulf %76, %77 : vector<16x128xf32>
    %79 = arith.mulf %78, %78 : vector<16x128xf32>
    %cst_57 = arith.constant dense<0.000000e+00> : vector<16xf32>
    %80 = vector.multi_reduction <add>, %79, %cst_57 [1] : vector<16x128xf32> to vector<16xf32>
    %81 = vector.shape_cast %80 : vector<16xf32> to vector<16x1xf32>
    %cst_58 = arith.constant 1.250000e-01 : f32
    %82 = vector.broadcast %cst_58 : f32 to vector<16x1xf32>
    %83 = arith.mulf %81, %82 : vector<16x1xf32>
    %cst_59 = arith.constant 9.99999974E-6 : f32
    %84 = vector.broadcast %cst_59 : f32 to vector<16x1xf32>
    %85 = arith.addf %83, %84 : vector<16x1xf32>
    %86 = math.rsqrt %85 : vector<16x1xf32>
    %87 = vector.broadcast %86 : vector<16x1xf32> to vector<16x128xf32>
    %88 = arith.mulf %76, %87 : vector<16x128xf32>
    %c1_60 = arith.constant 1 : index
    %c0_61 = arith.constant 0 : index
    %c0_62 = arith.constant 0 : index
    %89 = vector.load %arg4[%c1_60, %c0_61, %c0_62] : memref<2x1x128xf32, #tpu.memory_space<vmem>>, vector<1x1x128xf32>
    %90 = vector.shape_cast %89 : vector<1x1x128xf32> to vector<1x128xf32>
    %91 = vector.broadcast %90 : vector<1x128xf32> to vector<16x128xf32>
    %92 = arith.mulf %88, %91 : vector<16x128xf32>
    %c1_63 = arith.constant 1 : index
    %c0_64 = arith.constant 0 : index
    %c0_65 = arith.constant 0 : index
    %93 = vector.load %arg5[%c1_63, %c0_64, %c0_65] : memref<2x1x128xf32, #tpu.memory_space<vmem>>, vector<1x1x128xf32>
    %94 = vector.shape_cast %93 : vector<1x1x128xf32> to vector<1x128xf32>
    %95 = vector.broadcast %94 : vector<1x128xf32> to vector<16x128xf32>
    %96 = arith.addf %92, %95 : vector<16x128xf32>
    %c0_66 = arith.constant 0 : index
    %c0_67 = arith.constant 0 : index
    %c0_68 = arith.constant 0 : index
    %97 = vector.load %arg6[%c0_66, %c0_67, %c0_68] : memref<1x16x128xf32, #tpu.memory_space<vmem>>, vector<1x16x128xf32>
    %98 = vector.shape_cast %97 : vector<1x16x128xf32> to vector<16x128xf32>
    %99 = vector.shape_cast %96 : vector<16x128xf32> to vector<1x16x128xf32>
    tpu.vector_store %arg6[%c0_66, %c0_67, %c0_68], %99 {strides = array<i32>} : memref<1x16x128xf32, #tpu.memory_space<vmem>>, vector<1x16x128xf32>,
    return
  }
  func.func @transform_0(%arg0: i32) -> (i32, i32, i32) {
    %c0_i32 = arith.constant 0 : i32
    %c0_i32_0 = arith.constant 0 : i32
    %c0_i32_1 = arith.constant 0 : i32
    return %arg0, %c0_i32, %c0_i32_0 : i32, i32, i32
  }
  func.func @transform_1(%arg0: i32) -> (i32, i32, i32) {
    %c0_i32 = arith.constant 0 : i32
    %c0_i32_0 = arith.constant 0 : i32
    %c0_i32_1 = arith.constant 0 : i32
    %c0_i32_2 = arith.constant 0 : i32
    return %c0_i32, %c0_i32_0, %c0_i32_1 : i32, i32, i32
  }
  func.func @transform_2(%arg0: i32) -> (i32, i32, i32) {
    %c0_i32 = arith.constant 0 : i32
    %c0_i32_0 = arith.constant 0 : i32
    %c0_i32_1 = arith.constant 0 : i32
    %c0_i32_2 = arith.constant 0 : i32
    return %c0_i32, %c0_i32_0, %c0_i32_1 : i32, i32, i32
  }
  func.func @transform_3(%arg0: i32) -> (i32, i32, i32) {
    %c0_i32 = arith.constant 0 : i32
    %c0_i32_0 = arith.constant 0 : i32
    %c0_i32_1 = arith.constant 0 : i32
    %c0_i32_2 = arith.constant 0 : i32
    return %c0_i32, %c0_i32_0, %c0_i32_1 : i32, i32, i32
  }
  func.func @transform_4(%arg0: i32) -> (i32, i32, i32) {
    %c0_i32 = arith.constant 0 : i32
    %c0_i32_0 = arith.constant 0 : i32
    %c0_i32_1 = arith.constant 0 : i32
    %c0_i32_2 = arith.constant 0 : i32
    return %c0_i32, %c0_i32_0, %c0_i32_1 : i32, i32, i32
  }
  func.func @transform_5(%arg0: i32) -> (i32, i32, i32) {
    %c0_i32 = arith.constant 0 : i32
    %c0_i32_0 = arith.constant 0 : i32
    %c0_i32_1 = arith.constant 0 : i32
    return %arg0, %c0_i32, %c0_i32_0 : i32, i32, i32
  }
}

</mosaic_0001>

<bundles_post_ra>
// kernel: tpu_custom_call.1
= control target key start
LH: loop header
LB: loop body
LE: loop exit
PB: predicated region body
PF: predicated region fallthrough
CT: control target
= control target key end

     0   :  { %10 = vsyncpa [#allocation5], 0  ;;  %s1600_s0 = inlined_call_operand.vmem [shape: f32[2,16,4], index: 0, kind: input, shape index: {}]   ;;  %s1601_s1 = inlined_call_operand.hbm [shape: f32[2,384,128], index: 1, kind: input, shape index: {}]   ;;  %s1602_s2 = inlined_call_operand.vmem [shape: f32[2,1,128], index: 2, kind: input, shape index: {}]   ;;  %s1603_s3 = inlined_call_operand.vmem [shape: f32[2,1,128], index: 3, kind: input, shape index: {}]   ;;  %s1604_s4 = inlined_call_operand.vmem [shape: f32[2,1,128], index: 4, kind: input, shape index: {}]   ;;  %s1605_s5 = inlined_call_operand.hbm [shape: f32[2,16,128], index: 5, kind: output, shape index: {}]  }
   0x1   :  { %11 = vsyncpa [#allocation6], 0 }
   0x2   :  { %13 = vsyncpa [#allocation6 + $0x1], 0  ;;  %s1421_s18 = smov 0   ;;  %s1423_s19 = smov 0  }
   0x3   :  { %s1425_s20 = smov 0   ;;  %s1427_s21 = smov 0  }
   0x4 LB: > { %s1442_s22 = sadd.s32 4294967295, %s1382_s21   ;;  %s889_s23 = sadd.s32 4294967294, %s1382_s21   ;;  %s1382_s21 = sphi %s1427_s21, %s1621_s21   ;;  %s1378_s20 = sphi %s1425_s20, %s1620_s20   ;;  %s1374_s19 = sphi %s1423_s19, %s1619_s19   ;;  %s1370_s18 = sphi %s1421_s18, %s1618_s18  }
   0x5   : > { %s1446_s24 = sadd.s32 1, %s1382_s21   ;;  %s136_s25 = sadd.s32 1, %s1378_s20 }
   0x6   : > { %s133_s26 = ssub.s32 %s1382_s21, %s1446_s24  ;;  %p146_p0 = scmp.ne.s32.totalorder %s1378_s20, %s1374_s19 }
   0x7   : > { %p134_p1 = scmp.eq.s32.totalorder %s133_s26, 0  ;;  %p147_p2 = scmp.eq.s32.totalorder %s1442_s22, 1 }
   0x8   : > { %p152_p3 = scmp.ne.s32.totalorder %s1374_s19, %s1370_s18  ;;  %p153_p4 = scmp.eq.s32.totalorder %s889_s23, 1 }
   0x9   : > { %s1457_s27 = scalar_select %p134_p1, %s1378_s20, %s136_s25  }
   0xa   : > { %p1459_p5 = por %p147_p2, %p146_p0  ;;  %p1463_p6 = por %p153_p4, %p152_p3 }
   0xb   : > { %p890_p7 = scmp.ge.s32.totalorder %s1382_s21, 1  ;;  %p160_p8 = scmp.lt.s32.totalorder %s1382_s21, 3 }
   0xc   : > { %s1609_s28 = scalar_select %p1459_p5, 1, 0 }
   0xd   : > { %s1610_s29 = scalar_select %p1463_p6, 1, 0 }
   0xe   : > { %p1606_p9 = scmp.eq.s32.totalorder %s1442_s22, 0  ;;  %p1470_p10 = pnand %p890_p7, %p160_p8 }
   0xf   : > { %s1384_s6 = smov [#allocation4]   ;;  %s1288_s11 = scalar_lea.hbm %s1601_s1, 12288 }
  0x10   : > { %s1611_s30 = scalar_select %p1470_p10, 1, 0 }
  0x11   : > { %s172_s7 = sshll.u32 %s1384_s6, 4  ;;  %p1231_p11 = pneg %p1470_p10  ;;  %s173_s7 = int_to_ptr.vmem [resolvable:$true] %s172_s7 }
  0x12   : > { %p1289_p13 = scmp.ne.s32.totalorder %s1601_s1, %s1288_s11  ;;  %p1295_p3 = scmp.lt.u32.totalorder %s1288_s11, %s1601_s1 }
  0x13   : > { %p1478_p12 = pnand %p1606_p9, %p1231_p11 }
  0x15   : > { %p1290_p0 = pneg %p1478_p12 }
  0x17   : > { %p1291_p1 = pnand %p1290_p0, %p1289_p13 }
  0x19   : > { %p1292_p2 = pneg %p1291_p1 }
  0x1b   : > { %p1297_p4 = pnand %p1295_p3, %p1292_p2 }
  0x1d   : > { %1300 = shalt.err (!%p1297_p4)
}
  0x1e   : > { %s1301_s16 = scalar_lea.vmem %s173_s7, 12288  ;;  %p1309_p9 = scmp.lt.s32.totalorder %s173_s7, %s173_s7 }
  0x1f   : > { %p1302_p7 = scmp.ne.s32.totalorder %s173_s7, %s1301_s16  ;;  %p1310_p6 = scmp.lt.s32.totalorder %s1301_s16, %s1301_s16 }
  0x21   : > { %p1304_p8 = pnand %p1302_p7, %p1290_p0  ;;  %p1311_p5 = por %p1310_p6, %p1309_p9 }
  0x23   : > { %p1305_p11 = pneg %p1304_p8 }
  0x25   : > { %p1312_p10 = pnand %p1311_p5, %p1305_p11 }
  0x27   : > { %1315 = shalt.err (!%p1312_p10)
}
  0x28   : > { %s1385_s17 = smov 128   ;;  %s1386_s23 = smov 8  }
  0x29   : > { %1234 = dma.hbm_to_vmem [thread:$0]  (!%p1478_p12), %s1601_s1, 12288, %s173_s7, [#allocation5], %s1385_s17, %s1385_s17, %s1386_s23  }
  0x2a   : > { %p1613_p13 = scmp.ne.s32.totalorder %s1611_s30, 0 }
  0x2b   : > { %p1614_p1 = scmp.eq.s32.totalorder (!%p1613_p13), %s1442_s22, 0 }
  0x2c   : > { %205 = sbr.rel (%p1613_p13) target bundleno = 1184 (0x4a0), region = 40 }
  0x33   : > { %1361 = dma.done.wait (%p1614_p1), [#allocation5], 12288   ;;  %p1615_p0 = pmov %p1614_p1 }
  0x34   : > { %vm240_vm0 = vcmask 1047584   ;;  %v1387_v0 = vmov 0.0   ;;  %v287_v1 = vld [vmem:[#allocation4 + $0x80] sm:$0xff]  ;;  %v288_v2 = vld [vmem:[#allocation4 + $0x88] sm:$0xff]  ;;  %p233_p5 = scmp.lt.s32.totalorder %s1442_s22, 1  ;;  %v289_v10 = vld [vmem:[#allocation4 + $0x90] sm:$0xff] }
  0x35   : > { %1363 = vsyncadd (%p1615_p0), [#allocation5], 4294955008  ;;  %241 = vst.msk [vmem:[#allocation2 + $0x1] sm:$0xff] %vm240_vm0, %v1387_v0  ;;  %v271_v3 = vld [vmem:[#allocation4] sm:$0xff]  ;;  %v1097_v4 = vpack.c.bf16 %v288_v2, %v287_v1  ;;  %v272_v5 = vld [vmem:[#allocation4 + $0x8] sm:$0xff]  ;;  %vm245_vm1 = vcmask 31744  }
  0x36   : > { %238 = vst [vmem:[#allocation2] sm:$0x1] %v1387_v0  ;;  %239 = vst [vmem:[#allocation2 + $0x11] sm:$0x1] %v1387_v0  ;;  %v303_v6 = vld [vmem:[#allocation4 + $0x100] sm:$0xff]  ;;  %v304_v7 = vld [vmem:[#allocation4 + $0x108] sm:$0xff]  ;;  %v1099_v8 = vpack.c.bf16 %v272_v5, %v271_v3 }
  0x37   : > { %242 = vst.msk [vmem:[#allocation2 + $0x9] sm:$0xff] %vm240_vm0, %v1387_v0  ;;  %v1129_v9 = vpack.c.bf16 %v304_v7, %v303_v6  ;;  %v290_v11 = vld [vmem:[#allocation4 + $0x98] sm:$0xff]  ;;  %v273_v12 = vld [vmem:[#allocation4 + $0x10] sm:$0xff]  ;;  %1098 = vmatprep.subr.bf16.mxu0 %v1097_v4  ;;  %v291_v19 = vld [vmem:[#allocation4 + $0xa0] sm:$0xff]  ;;  %s234_s30 = scalar_select %p233_p5, %s1442_s22, 1  ;;  %vm522_vm3 = vcmask 1040384  }
  0x38   : > { %v1101_v13 = vpack.c.bf16 %v290_v11, %v289_v10  ;;  %v274_v14 = vld [vmem:[#allocation4 + $0x18] sm:$0xff]  ;;  %v305_v15 = vld [vmem:[#allocation4 + $0x110] sm:$0xff]  ;;  %1100 = vmatpush3.bf16.msra.mxu0 %v1099_v8  ;;  %v292_v20 = vld [vmem:[#allocation4 + $0xa8] sm:$0xff]  ;;  %vm532_vm4 = vcmask 1046528   ;;  %s230_s23 = sand.u32 1, %s1374_s19   ;;  %s914_s8 = sshll.u32 %s1442_s22, 8 }
  0x39   : > { %v306_v16 = vld [vmem:[#allocation4 + $0x118] sm:$0xff]  ;;  %1130 = vmatprep.subr.bf16.mxu1 %v1129_v9  ;;  %v1103_v17 = vpack.c.bf16 %v274_v14, %v273_v12  ;;  %v275_v21 = vld [vmem:[#allocation4 + $0x20] sm:$0xff]  ;;  %v1105_v22 = vpack.c.bf16 %v292_v20, %v291_v19  ;;  %v276_v23 = vld [vmem:[#allocation4 + $0x28] sm:$0xff]  ;;  %s913_s6 = sshll.u32 %s234_s30, 4  ;;  %s895_s30 = sshll.u32 %s230_s23, 4 }
  0x3a   : > { %v1133_v18 = vpack.c.bf16 %v306_v16, %v305_v15  ;;  %1102 = vmatprep.subr.bf16.mxu0 %v1101_v13  ;;  %1132 = vmatpush3.bf16.msra.mxu1 %v1129_v9  ;;  %v307_v24 = vld [vmem:[#allocation4 + $0x120] sm:$0xff]  ;;  %v308_v25 = vld [vmem:[#allocation4 + $0x128] sm:$0xff]  ;;  %v293_v27 = vld [vmem:[#allocation4 + $0xb0] sm:$0xff]  ;;  %v1107_v31 = vpack.c.bf16 %v276_v23, %v275_v21  ;;  %s237_s9 = scalar_lea.vmem %s1600_s0, %s913_s6  ;;  %s1555_s13 = scalar_lea.hbm %s1605_s5, %s914_s8 }
  0x3b   : > { %v1137_v26 = vpack.c.bf16 %v308_v25, %v307_v24  ;;  %v294_v28 = vld [vmem:[#allocation4 + $0xb8] sm:$0xff]  ;;  %v309_v29 = vld [vmem:[#allocation4 + $0x130] sm:$0xff]  ;;  %v295_v36 = vld [vmem:[#allocation4 + $0xc0] sm:$0xff]  ;;  %s1559_s14 = scalar_lea.sflag [#allocation6], %s230_s23  ;;  %p1616_p9 = scmp.ne.s32.totalorder %s1609_s28, 0 }
  0x3c   : > { %1134 = vmatprep.subr.bf16.mxu1 %v1133_v18  ;;  %v310_v30 = vld [vmem:[#allocation4 + $0x138] sm:$0xff]  ;;  %1104 = vmatpush3.bf16.msra.mxu0 %v1103_v17  ;;  %v1109_v32 = vpack.c.bf16 %v294_v28, %v293_v27  ;;  %v277_v33 = vld [vmem:[#allocation4 + $0x30] sm:$0xff]  ;;  %v296_v37 = vld [vmem:[#allocation4 + $0xc8] sm:$0xff]  ;;  %s1388_s22 = smov [#allocation7]  }
  0x3d   : > { %1106 = vmatprep.subr.bf16.mxu0 %v1105_v22  ;;  %v278_v34 = vld [vmem:[#allocation4 + $0x38] sm:$0xff]  ;;  %v1141_v35 = vpack.c.bf16 %v310_v30, %v309_v29  ;;  %v311_v38 = vld [vmem:[#allocation4 + $0x140] sm:$0xff]  ;;  %v312_v39 = vld [vmem:[#allocation4 + $0x148] sm:$0xff]  ;;  %v1113_v41 = vpack.c.bf16 %v296_v37, %v295_v36  ;;  %v248_v36 = vlaneseq  ;;  %s1320_s16 = sshll.u32 %s1388_s22, 4  ;;  %s1321_s16 = int_to_ptr.vmem [resolvable:$false] %s1320_s16 }
  0x3e   : > { %1136 = vmatpush3.bf16.msra.mxu1 %v1133_v18  ;;  %v1111_v40 = vpack.c.bf16 %v278_v34, %v277_v33  ;;  %v279_v42 = vld [vmem:[#allocation4 + $0x40] sm:$0xff]  ;;  %v280_v43 = vld [vmem:[#allocation4 + $0x48] sm:$0xff]  ;;  %v1145_v44 = vpack.c.bf16 %v312_v39, %v311_v38  ;;  %v297_v45 = vld [vmem:[#allocation4 + $0xd0] sm:$0xff]  ;;  %s1322_s17 = scalar_lea.vmem %s1321_s16, 512 }
  0x3f   : > { %1138 = vmatprep.subr.bf16.mxu1 %v1137_v26  ;;  %v298_v46 = vld [vmem:[#allocation4 + $0xd8] sm:$0xff]  ;;  %v313_v47 = vld [vmem:[#allocation4 + $0x150] sm:$0xff]  ;;  %v1115_v50 = vpack.c.bf16 %v280_v43, %v279_v42  ;;  %v244_v51 = vld [vmem:[%s237_s9 + $0x8] sm:$0xff]  ;;  %v249_v37 = vand.u32 127, %v248_v36 }
  0x40   : > { %1108 = vmatpush3.bf16.msra.mxu0 %v1107_v31  ;;  %v314_v48 = vld [vmem:[#allocation4 + $0x158] sm:$0xff]  ;;  %v1117_v52 = vpack.c.bf16 %v298_v46, %v297_v45  ;;  %v281_v53 = vld [vmem:[#allocation4 + $0x50] sm:$0xff]  ;;  %247 = vst.msk [vmem:[#allocation2 + $0x9] sm:$0xff] %vm245_vm1, %v244_v51  ;;  %v299_v56 = vld [vmem:[#allocation4 + $0xe0] sm:$0xff] }
  0x41   : > { %1110 = vmatprep.subr.bf16.mxu0 %v1109_v32  ;;  %v243_v49 = vld [vmem:[%s237_s9] sm:$0xff]  ;;  %v1149_v55 = vpack.c.bf16 %v314_v48, %v313_v47  ;;  %v300_v57 = vld [vmem:[#allocation4 + $0xe8] sm:$0xff]  ;;  %v315_v58 = vld [vmem:[#allocation4 + $0x160] sm:$0xff]  ;;  %vm250_vm2 = vcmp.lt.s32.totalorder %v249_v37, 8  ;;  %s232_s9 = scalar_lea.vmem [#allocation7], %s895_s30 }
  0x42   : > { %1140 = vmatpush3.bf16.msra.mxu1 %v1137_v26  ;;  %246 = vst.msk [vmem:[#allocation2 + $0x1] sm:$0xff] %vm245_vm1, %v243_v49  ;;  %v282_v54 = vld [vmem:[#allocation4 + $0x58] sm:$0xff]  ;;  %v316_v59 = vld [vmem:[#allocation4 + $0x168] sm:$0xff]  ;;  %v1121_v61 = vpack.c.bf16 %v300_v57, %v299_v56  ;;  %v283_v62 = vld [vmem:[#allocation4 + $0x60] sm:$0xff]  ;;  %s815_s10 = sshll.u32 %s232_s9, 4  ;;  %s1557_s10 = int_to_ptr.vmem [resolvable:$true] %s815_s10 }
  0x43   : > { %1142 = vmatprep.subr.bf16.mxu1 %v1141_v35  ;;  %v1119_v60 = vpack.c.bf16 %v282_v54, %v281_v53  ;;  %v284_v63 = vld [vmem:[#allocation4 + $0x68] sm:$0xff]  ;;  %v1153_v1 = vpack.c.bf16 %v316_v59, %v315_v58  ;;  %v301_v2 = vld [vmem:[#allocation4 + $0xf0] sm:$0xff]  ;;  %v302_v3 = vld [vmem:[#allocation4 + $0xf8] sm:$0xff]  ;;  %s1316_s15 = scalar_lea.vmem %s1557_s10, 256  ;;  %p1323_p2 = scmp.lt.s32.totalorder %s1557_s10, %s1321_s16 }
  0x44   : > { %1112 = vmatpush3.bf16.msra.mxu0 %v1111_v40  ;;  %v317_v4 = vld [vmem:[#allocation4 + $0x170] sm:$0xff]  ;;  %v318_v6 = vld [vmem:[#allocation4 + $0x178] sm:$0xff]  ;;  %v1123_v8 = vpack.c.bf16 %v284_v63, %v283_v62  ;;  %v1125_v11 = vpack.c.bf16 %v302_v3, %v301_v2  ;;  %v563_v33 = vld [vmem:[#allocation4 + $0x200] sm:$0xff]  ;;  %v1521_v40 = vsel %vm250_vm2, 1.0, %v1387_v0  ;;  %p1317_p6 = scmp.ne.s32.totalorder %s1557_s10, %s1316_s15  ;;  %p1324_p3 = scmp.lt.s32.totalorder %s1322_s17, %s1316_s15 }
  0x45   : > { %1114 = vmatprep.subr.bf16.mxu0 %v1113_v41  ;;  %v285_v12 = vld [vmem:[#allocation4 + $0x70] sm:$0xff]  ;;  %v286_v13 = vld [vmem:[#allocation4 + $0x78] sm:$0xff]  ;;  %v1157_v14 = vpack.c.bf16 %v318_v6, %v317_v4  ;;  %v564_v34 = vld [vmem:[#allocation4 + $0x208] sm:$0xff] }
  0x46   : > { %1144 = vmatpush3.bf16.msra.mxu1 %v1141_v35  ;;  %v1127_v15 = vpack.c.bf16 %v286_v13, %v285_v12  ;;  %v899_v21 = vld [vmem:[%s1602_s2] ss:$0 sm:$0xff]  ;;  %v1161_v35 = vpack.c.bf16 %v564_v34, %v563_v33  ;;  %v547_v49 = vld [vmem:[#allocation4 + $0x180] sm:$0xff]  ;;  %v565_v51 = vld [vmem:[#allocation4 + $0x210] sm:$0xff]  ;;  %p1318_p10 = pnand %p1317_p6, %p1616_p9  ;;  %p1325_p4 = por %p1324_p3, %p1323_p2 }
  0x47   : > { %1146 = vmatprep.subr.bf16.mxu1 %v1145_v44  ;;  %v262_v10 = vld [vmem:[#allocation2 + $0xa] sm:$0xff]  ;;  %v550_v56 = vld [vmem:[#allocation4 + $0x198] sm:$0xff]  ;;  %v581_v62 = vld [vmem:[#allocation4 + $0x290] sm:$0xff] }
  0x48   : > { %1116 = vmatpush3.bf16.msra.mxu0 %v1115_v50  ;;  %264 = vst [vmem:[#allocation3 + $0x28] sm:$0xff] %v262_v10  ;;  %v258_v16 = vld [vmem:[#allocation2 + $0x9] sm:$0xff]  ;;  %v582_v3 = vld [vmem:[#allocation4 + $0x298] sm:$0xff]  ;;  %v569_v6 = vld [vmem:[#allocation4 + $0x230] sm:$0xff]  ;;  %p1319_p12 = pneg %p1318_p10 }
  0x49   : > { %1118 = vmatprep.subr.bf16.mxu0 %v1117_v52  ;;  %v257_v5 = vld [vmem:[#allocation2 + $0x1] sm:$0xff]  ;;  %v548_v50 = vld [vmem:[#allocation4 + $0x188] sm:$0xff] }
  0x4a   : > { %1148 = vmatpush3.bf16.msra.mxu1 %v1145_v44  ;;  %v253_v7 = vld [vmem:[#allocation2] sm:$0xff]  ;;  %390 = vmatprep.mubr.f32.mxu0 %v257_v5  ;;  %v254_v17 = vld [vmem:[#allocation2 + $0x8] sm:$0xff]  ;;  %v1163_v0 = vpack.c.bf16 %v548_v50, %v547_v49  ;;  %v580_v57 = vld [vmem:[#allocation4 + $0x288] sm:$0xff]  ;;  %v1197_v5 = vpack.c.bf16 %v582_v3, %v581_v62  ;;  %p1326_p7 = pnand %p1325_p4, %p1319_p12 }
  0x4b   : > { %1150 = vmatprep.subr.bf16.mxu1 %v1149_v55  ;;  %255 = vst [vmem:[#allocation3] sm:$0xff] %v253_v7  ;;  %v261_v9 = vld [vmem:[#allocation2 + $0x2] sm:$0xff]  ;;  %v552_v2 = vld [vmem:[#allocation4 + $0x1a8] sm:$0xff]  ;;  %v561_v49 = vld [vmem:[#allocation4 + $0x1f0] sm:$0xff] }
  0x4c   : > { %1120 = vmatpush3.bf16.msra.mxu0 %v1119_v60  ;;  %1059 = vmatprep.mubr.f32.mxu1 %v261_v9  ;;  %v566_v52 = vld [vmem:[#allocation4 + $0x218] sm:$0xff]  ;;  %v579_v53 = vld [vmem:[#allocation4 + $0x280] sm:$0xff]  ;;  %v584_v12 = vld [vmem:[#allocation4 + $0x2a8] sm:$0xff] }
  0x4d   : > { %1122 = vmatprep.subr.bf16.mxu0 %v1121_v61  ;;  %v1165_v54 = vpack.c.bf16 %v566_v52, %v565_v51  ;;  %v1193_v59 = vpack.c.bf16 %v580_v57, %v579_v53  ;;  %v567_v60 = vld [vmem:[#allocation4 + $0x220] sm:$0xff]  ;;  %v568_v61 = vld [vmem:[#allocation4 + $0x228] sm:$0xff]  ;;  %v562_v50 = vld [vmem:[#allocation4 + $0x1f8] sm:$0xff] }
  0x4e   : > { %1152 = vmatpush3.bf16.msra.mxu1 %v1149_v55  ;;  %v549_v55 = vld [vmem:[#allocation4 + $0x190] sm:$0xff]  ;;  %v1169_v63 = vpack.c.bf16 %v568_v61, %v567_v60  ;;  %v575_v33 = vld [vmem:[#allocation4 + $0x260] sm:$0xff]  ;;  %v576_v34 = vld [vmem:[#allocation4 + $0x268] sm:$0xff]  ;;  %v1191_v51 = vpack.c.bf16 %v562_v50, %v561_v49 }
  0x4f   : > { %1154 = vmatprep.subr.bf16.mxu1 %v1153_v1  ;;  %v1167_v58 = vpack.c.bf16 %v550_v56, %v549_v55  ;;  %v1185_v36 = vpack.c.bf16 %v576_v34, %v575_v33  ;;  %v559_v37 = vld [vmem:[#allocation4 + $0x1e0] sm:$0xff]  ;;  %v593_v53 = vld [vmem:[#allocation4 + $0x2f0] sm:$0xff]  ;;  %v905_v50 = vld [vmem:[%s1603_s3 + $0x1] ss:$0 sm:$0xff] }
  0x50   : > { %1124 = vmatpush3.bf16.msra.mxu0 %v1123_v8  ;;  %v583_v8 = vld [vmem:[#allocation4 + $0x2a0] sm:$0xff] }
  0x51   : > { %1126 = vmatprep.subr.bf16.mxu0 %v1125_v11  ;;  %v554_v11 = vld [vmem:[#allocation4 + $0x1b8] sm:$0xff] }
  0x52   : > { %1156 = vmatpush3.bf16.msra.mxu1 %v1153_v1  ;;  %v551_v1 = vld [vmem:[#allocation4 + $0x1a0] sm:$0xff] }
  0x53   : > { %1158 = vmatprep.subr.bf16.mxu1 %v1157_v14  ;;  %v1171_v4 = vpack.c.bf16 %v552_v2, %v551_v1  ;;  %v901_v2 = vld [vmem:[%s1604_s4] ss:$0 sm:$0xff] }
  0x54   : > { %1128 = vmatpush3.bf16.msra.mxu0 %v1127_v15  ;;  %v571_v15 = vld [vmem:[#allocation4 + $0x240] sm:$0xff] }
  0x55   : > { %1162 = vmatprep.subr.bf16.mxu0 %v1161_v35  ;;  %v589_v35 = vld [vmem:[#allocation4 + $0x2d0] sm:$0xff] }
  0x56   : > { %1160 = vmatpush3.bf16.msra.mxu1 %v1157_v14  ;;  %v1201_v14 = vpack.c.bf16 %v584_v12, %v583_v8 }
  0x57   : > { %391 = vmatmul.mubr.f32.vlgmr.msra.gmra.mrb[0].mxu0 %v253_v7  ;;  %1194 = vmatprep.subr.bf16.mxu1 %v1193_v59  ;;  %v570_v7 = vld [vmem:[#allocation4 + $0x238] sm:$0xff] }
  0x58   : > { %395 = vmatprep.mubr.f32.mxu0 %v258_v16  ;;  %1164 = vmatpush3.bf16.msra.mxu0 %v1163_v0  ;;  %v1173_v9 = vpack.c.bf16 %v570_v7, %v569_v6  ;;  %v572_v16 = vld [vmem:[#allocation4 + $0x248] sm:$0xff] }
  0x59   : > { %1060 = vmatmul.mubr.f32.vlgmr.msra.gmra.mrb[0].mxu1 %v262_v10  ;;  %1166 = vmatprep.subr.bf16.mxu0 %v1165_v54  ;;  %v553_v10 = vld [vmem:[#allocation4 + $0x1b0] sm:$0xff]  ;;  %v592_v0 = vld [vmem:[#allocation4 + $0x2e8] sm:$0xff]  ;;  %v594_v54 = vld [vmem:[#allocation4 + $0x2f8] sm:$0xff] }
  0x5a   : > { %1196 = vmatpush3.bf16.msra.mxu1 %v1193_v59  ;;  %v1175_v13 = vpack.c.bf16 %v554_v11, %v553_v10  ;;  %v1221_v55 = vpack.c.bf16 %v594_v54, %v593_v53 }
  0x5b   : > { %396 = vmatmul.mubr.f32.gmra.mrb[2].mxu0 %v254_v17  ;;  %1198 = vmatprep.subr.bf16.mxu1 %v1197_v5  ;;  %v585_v17 = vld [vmem:[#allocation4 + $0x2b0] sm:$0xff] }
  0x5c   : > { %1168 = vmatpush3.bf16.msra.mxu0 %v1167_v58 }
  0x5d   : > { %1170 = vmatprep.subr.bf16.mxu0 %v1169_v63  ;;  %v900_v63 = vld [vmem:[%s1603_s3] ss:$0 sm:$0xff] }
  0x5e   : > { %1200 = vmatpush3.bf16.msra.mxu1 %v1197_v5 }
  0x5f   : > { %1202 = vmatprep.subr.bf16.mxu1 %v1201_v14 }
  0x60   : > { %1172 = vmatpush3.bf16.msra.mxu0 %v1171_v4 }
  0x61   : > { %1174 = vmatprep.subr.bf16.mxu0 %v1173_v9 }
  0x62   : > { %1204 = vmatpush3.bf16.msra.mxu1 %v1201_v14 }
  0x64   : > { %1176 = vmatpush3.bf16.msra.mxu0 %v1175_v13 }
 0x12a   : > { %v947_v18 = vpop.f32.mrb[0].mxu0 }
 0x12b   : > { %v948_v19 = vpop.f32.mrb[1].mxu0 }
 0x12c   : > { %v1061_v20 = vpop.f32.mrb[0].mxu1  ;;  %v949_v22 = vadd.f32 %v948_v19, %v947_v18  ;;  %v1177_v18 = vpack.c.bf16 %v572_v16, %v571_v15  ;;  %v555_v19 = vld [vmem:[#allocation4 + $0x1c0] sm:$0xff] }
 0x12d   : > { %v467_v23 = vpop.f32.mrb[1].mxu1 }
 0x12e   : > { %v950_v24 = vpop.f32.mrb[2].mxu0  ;;  %v393_v25 = vadd.f32 %v949_v22, %v899_v21  ;;  %1178 = vmatprep.subr.bf16.mxu0 %v1177_v18 }
 0x12f   : > { %v951_v26 = vpop.f32.mrb[3].mxu0 }
 0x130   : > { %v468_v27 = vadd.f32 %v467_v23, %v393_v25  ;;  %v952_v28 = vadd.f32 %v951_v26, %v950_v24  ;;  %v573_v24 = vld [vmem:[#allocation4 + $0x250] sm:$0xff]  ;;  %v574_v25 = vld [vmem:[#allocation4 + $0x258] sm:$0xff]  ;;  %v587_v26 = vld [vmem:[#allocation4 + $0x2c0] sm:$0xff] }
 0x132   : > { %v476_v29 = vmax.f32 %v468_v27, 0.0  ;;  %v398_v30 = vadd.f32 %v952_v28, %v899_v21  ;;  %v586_v21 = vld [vmem:[#allocation4 + $0x2b8] sm:$0xff]  ;;  %v1181_v27 = vpack.c.bf16 %v574_v25, %v573_v24  ;;  %v557_v28 = vld [vmem:[#allocation4 + $0x1d0] sm:$0xff] }
 0x133   : > { %v1205_v23 = vpack.c.bf16 %v586_v21, %v585_v17  ;;  %v903_v17 = vld [vmem:[%s1602_s2 + $0x1] ss:$0 sm:$0xff] }
 0x134   : > { %478 = vadd.xlane.f32.xlu0 %v476_v29  ;;  %v473_v31 = vadd.f32 %v1061_v20, %v398_v30  ;;  %v556_v20 = vld [vmem:[#allocation4 + $0x1c8] sm:$0xff] }
 0x135   : > { %v1179_v22 = vpack.c.bf16 %v556_v20, %v555_v19  ;;  %1206 = vmatprep.subr.bf16.mxu1 %v1205_v23  ;;  %v588_v30 = vld [vmem:[#allocation4 + $0x2c8] sm:$0xff] }
 0x136   : > { %v477_v32 = vmax.f32 %v473_v31, 0.0  ;;  %1208 = vmatpush3.bf16.msra.mxu1 %v1205_v23 }
 0x137   : > { %1180 = vmatpush3.bf16.msra.mxu0 %v1179_v22 }
 0x138   : > { %480 = vadd.xlane.f32.xlu0 %v477_v32  ;;  %1182 = vmatprep.subr.bf16.mxu0 %v1181_v27 }
 0x1c1   : > { %v479_v38 = vpop.xlane.xlu0 %478 }
 0x1c2   : > { %v482_v39 = vmul.f32 0.125, %v479_v38  ;;  %v560_v38 = vld [vmem:[#allocation4 + $0x1e8] sm:$0xff] }
 0x1c4   : > { %v1523_v41 = vsub.f32 %v476_v29, %v482_v39  ;;  %v558_v29 = vld [vmem:[#allocation4 + $0x1d8] sm:$0xff] }
 0x1c5   : > { %v481_v42 = vpop.xlane.xlu0 %480  ;;  %v1183_v31 = vpack.c.bf16 %v558_v29, %v557_v28  ;;  %v590_v39 = vld [vmem:[#allocation4 + $0x2d8] sm:$0xff] }
 0x1c6   : > { %v483_v43 = vmul.f32 0.125, %v481_v42  ;;  %v486_v44 = vmul.f32 %v1521_v40, %v1523_v41  ;;  %v1187_v42 = vpack.c.bf16 %v560_v38, %v559_v37 }
 0x1c7   : > { %1184 = vmatpush3.bf16.msra.mxu0 %v1183_v31 }
 0x1c8   : > { %v1527_v45 = vsub.f32 %v477_v32, %v483_v43  ;;  %v488_v46 = vmul.f32 %v486_v44, %v486_v44  ;;  %v1209_v32 = vpack.c.bf16 %v588_v30, %v587_v26  ;;  %v1213_v43 = vpack.c.bf16 %v590_v39, %v589_v35  ;;  %1186 = vmatprep.subr.bf16.mxu0 %v1185_v36  ;;  %v577_v44 = vld [vmem:[#allocation4 + $0x270] sm:$0xff] }
 0x1ca   : > { %490 = vadd.xlane.f32.xlu1 %v488_v46  ;;  %v487_v47 = vmul.f32 %v1521_v40, %v1527_v45  ;;  %1210 = vmatprep.subr.bf16.mxu1 %v1209_v32  ;;  %v578_v46 = vld [vmem:[#allocation4 + $0x278] sm:$0xff] }
 0x1cb   : > { %1212 = vmatpush3.bf16.msra.mxu1 %v1209_v32  ;;  %1188 = vmatpush3.bf16.msra.mxu0 %v1187_v42 }
 0x1cc   : > { %v489_v48 = vmul.f32 %v487_v47, %v487_v47  ;;  %1214 = vmatprep.subr.bf16.mxu1 %v1213_v43  ;;  %v591_v47 = vld [vmem:[#allocation4 + $0x2e0] sm:$0xff] }
 0x1cd   : > { %v1217_v52 = vpack.c.bf16 %v592_v0, %v591_v47 }
 0x1ce   : > { %492 = vadd.xlane.f32.xlu1 %v489_v48  ;;  %v1189_v48 = vpack.c.bf16 %v578_v46, %v577_v44 }
 0x1cf   : > { %1216 = vmatpush3.bf16.msra.mxu1 %v1213_v43 }
 0x1d0   : > { %1190 = vmatprep.subr.bf16.mxu0 %v1189_v48  ;;  %1218 = vmatprep.subr.bf16.mxu1 %v1217_v52 }
 0x1d1   : > { %1192 = vmatpush3.bf16.msra.mxu0 %v1191_v51 }
 0x1d3   : > { %1220 = vmatpush3.bf16.msra.mxu1 %v1217_v52 }
 0x1d4   : > { %1222 = vmatprep.subr.bf16.mxu1 %v1221_v55 }
 0x1d7   : > { %1224 = vmatpush3.bf16.msra.mxu1 %v1221_v55 }
 0x257   : > { %v491_v56 = vpop.xlane.xlu1 %490 }
 0x258   : > { %v494_v57 = vmul.f32 0.125, %v491_v56 }
 0x25a   : > { %v496_v58 = vadd.f32 1e-05, %v494_v57 }
 0x25b   : > { %v493_v59 = vpop.xlane.xlu1 %492 }
 0x25c   : > { %1280 = vrsqrt.f32 %v496_v58  ;;  %v495_v60 = vmul.f32 0.125, %v493_v59 }
 0x25e   : > { %v497_v61 = vadd.f32 1e-05, %v495_v60 }
 0x260   : > { %1282 = vrsqrt.f32 %v497_v61 }
 0x266   : > { %v1281_v62 = vpop.eup %1280 }
 0x267   : > { %v500_v1 = vmul.f32 %v1281_v62, %v1523_v41 }
 0x269   : > { %v509_v3 = vmul.f32 %v900_v63, %v500_v1 }
 0x26a   : > { %v1283_v4 = vpop.eup %1282 }
 0x26b   : > { %v518_v5 = vadd.f32 %v901_v2, %v509_v3  ;;  %v501_v6 = vmul.f32 %v1283_v4, %v1527_v45 }
 0x26d   : > { %v523_v7 = vrot.slane %v518_v5, 7  ;;  %v510_v8 = vmul.f32 %v900_v63, %v501_v6  ;;  %667 = vmatprep.mubr.f32.mxu0 %v518_v5  ;;  %v533_v10 = vrot.slane %v518_v5, 1 }
 0x26f   : > { %528 = vst [vmem:[#allocation3] sm:$0xfe] %v523_v7  ;;  %v519_v9 = vadd.f32 %v901_v2, %v510_v8 }
 0x271   : > { %v524_v11 = vrot.slane %v519_v9, 7  ;;  %v534_v12 = vrot.slane %v519_v9, 1 }
 0x273   : > { %v525_v41 = vsel %vm522_vm3, %v523_v7, %v524_v11  ;;  %v535_v13 = vsel %vm532_vm4, %v533_v10, %v534_v12  ;;  %539 = vst [vmem:[#allocation3 + $0x28] sm:$0x7f] %v534_v12 }
 0x274   : > { %1094 = vmatprep.mubr.f32.mxu1 %v535_v13 }
 0x276   : > { %v540_v14 = vld [vmem:[#allocation3] sm:$0xff] }
 0x277   : > { %668 = vmatmul.mubr.f32.vlgmr.msra.gmra.mrb[4].mxu0 %v540_v14 }
 0x278   : > { %672 = vmatprep.mubr.f32.mxu0 %v519_v9 }
 0x27a   : > { %v545_v15 = vld [vmem:[#allocation3 + $0x28] sm:$0xff] }
 0x27b   : > { %673 = vmatmul.mubr.f32.gmra.mrb[6].mxu0 %v525_v41  ;;  %1095 = vmatmul.mubr.f32.vlgmr.msra.gmra.mrb[2].mxu1 %v545_v15 }
 0x34a   : > { %v1003_v45 = vpop.f32.mrb[4].mxu0 }
 0x34b   : > { %v1004_v16 = vpop.f32.mrb[5].mxu0 }
 0x34c   : > { %v1005_v18 = vadd.f32 %v1004_v16, %v1003_v45 }
 0x34e   : > { %v1006_v19 = vpop.f32.mrb[6].mxu0  ;;  %v1096_v20 = vpop.f32.mrb[2].mxu1  ;;  %v670_v21 = vadd.f32 %v1005_v18, %v903_v17 }
 0x34f   : > { %v1007_v22 = vpop.f32.mrb[7].mxu0  ;;  %v744_v23 = vpop.f32.mrb[3].mxu1 }
 0x350   : > { %v1008_v24 = vadd.f32 %v1007_v22, %v1006_v19  ;;  %v745_v25 = vadd.f32 %v744_v23, %v670_v21 }
 0x352   : > { %v675_v26 = vadd.f32 %v1008_v24, %v903_v17  ;;  %v753_v27 = vmax.f32 %v745_v25, 0.0 }
 0x354   : > { %v750_v28 = vadd.f32 %v1096_v20, %v675_v26  ;;  %755 = vadd.xlane.f32.xlu0 %v753_v27 }
 0x356   : > { %v754_v29 = vmax.f32 %v750_v28, 0.0 }
 0x358   : > { %757 = vadd.xlane.f32.xlu1 %v754_v29 }
 0x3e1   : > { %v756_v30 = vpop.xlane.xlu0 %755 }
 0x3e2   : > { %v759_v31 = vmul.f32 0.125, %v756_v30 }
 0x3e4   : > { %v761_v32 = vsub.f32 %v753_v27, %v759_v31 }
 0x3e5   : > { %v758_v33 = vpop.xlane.xlu1 %757 }
 0x3e6   : > { %v760_v34 = vmul.f32 0.125, %v758_v33  ;;  %v763_v35 = vmul.f32 %v1521_v40, %v761_v32 }
 0x3e8   : > { %v762_v36 = vsub.f32 %v754_v29, %v760_v34  ;;  %v765_v37 = vmul.f32 %v763_v35, %v763_v35 }
 0x3ea   : > { %767 = vadd.xlane.f32.xlu0 %v765_v37  ;;  %v764_v38 = vmul.f32 %v1521_v40, %v762_v36  ;;  %v907_v40 = vld [vmem:[%s1604_s4 + $0x1] ss:$0 sm:$0xff] }
 0x3ec   : > { %v766_v39 = vmul.f32 %v764_v38, %v764_v38 }
 0x3ee   : > { %769 = vadd.xlane.f32.xlu1 %v766_v39 }
 0x477   : > { %v768_v42 = vpop.xlane.xlu0 %767 }
 0x478   : > { %v771_v43 = vmul.f32 0.125, %v768_v42 }
 0x47a   : > { %v773_v44 = vadd.f32 1e-05, %v771_v43 }
 0x47b   : > { %v770_v46 = vpop.xlane.xlu1 %769 }
 0x47c   : > { %1284 = vrsqrt.f32 %v773_v44  ;;  %v772_v47 = vmul.f32 0.125, %v770_v46 }
 0x47e   : > { %v774_v48 = vadd.f32 1e-05, %v772_v47 }
 0x480   : > { %1286 = vrsqrt.f32 %v774_v48 }
 0x486   : > { %v1285_v49 = vpop.eup %1284 }
 0x487   : > { %v777_v0 = vmul.f32 %v1285_v49, %v761_v32 }
 0x489   : > { %v787_v51 = vmul.f32 %v905_v50, %v777_v0 }
 0x48a   : > { %v1287_v52 = vpop.eup %1286 }
 0x48b   : > { %v797_v53 = vadd.f32 %v907_v40, %v787_v51  ;;  %v778_v54 = vmul.f32 %v1287_v52, %v762_v36 }
 0x48d   : > { %v788_v55 = vmul.f32 %v905_v50, %v778_v54  ;;  %799 = vst [vmem:[%s232_s9] sm:$0xff] %v797_v53 }
 0x48f   : > { %v798_v56 = vadd.f32 %v907_v40, %v788_v55 }
 0x491   : > { %800 = vst [vmem:[%s232_s9 + $0x8] sm:$0xff] %v798_v56 }
 0x492   : > { %1329 = shalt.err (!%p1326_p7)
}
 0x493   : > { %s1330_s23 = scalar_lea.hbm %s1555_s13, 256  ;;  %s1334_s30 = scalar_lea.hbm %s1605_s5, 512 }
 0x494   : > { %p1331_p8 = scmp.ne.s32.totalorder %s1555_s13, %s1330_s23  ;;  %p1335_p1 = scmp.lt.u32.totalorder %s1555_s13, %s1605_s5 }
 0x495   : > { %p1336_p0 = scmp.lt.u32.totalorder %s1334_s30, %s1330_s23  ;;  %p1338_p6 = scmp.lt.u32.totalorder %s1330_s23, %s1555_s13 }
 0x496   : > { %p1332_p11 = pnand %p1331_p8, %p1616_p9 }
 0x497   : > { %p1337_p5 = por %p1336_p0, %p1335_p1 }
 0x498   : > { %p1333_p13 = pneg %p1332_p11 }
 0x499   : > { %p1339_p10 = por %p1338_p6, %p1337_p5 }
 0x49b   : > { %p1340_p12 = pnand %p1339_p10, %p1333_p13 }
 0x49d   : > { %1343 = shalt.err (!%p1340_p12)
}
 0x49e   : > { %s1389_s8 = smov 128   ;;  %s1390_s9 = smov 8  }
 0x49f   : > { %1229 = dma.vmem_to_hbm [thread:$0]  (%p1616_p9), %s1557_s10, 256, %s1555_s13, %s1559_s14, %s1389_s8, %s1389_s8, %s1390_s9  }
 0x4a0 PF: > { %p1241_p2 = scmp.ge.s32.totalorder %s1382_s21, 2  ;;  %s830_s11 = sand.u32 1, %s1370_s18  }
 0x4a1   : > { %p1617_p3 = scmp.ne.s32.totalorder %s1610_s29, 0  ;;  %s831_s12 = scalar_lea.sflag [#allocation6], %s830_s11 }
 0x4a3   : > { %p1236_p4 = pnand %p1241_p2, %p1617_p3 }
 0x4a5   : > { %1365 = dma.done.wait (!%p1236_p4), %s831_s12, 256  }
 0x4a6   : > { %1367 = vsyncadd (!%p1236_p4), %s831_s12, 4294967040  ;;  %p16_p7 = scmp.ge.s32.totalorder %s1446_s24, 4   ;;  %s1618_s18 = smov %s1374_s19 }
 0x4a7   : > { %s1619_s19 = smov %s1378_s20  ;;  %s1620_s20 = smov %s1457_s27 }
 0x4a8   : > { %s1621_s21 = smov %s1446_s24  ;;  %18 = sbr.rel (!%p16_p7) target bundleno = 4 (0x4), region = 84 }
 0x4af   :  { %836 = vsyncpa [#allocation5], 1 }
 0x4b0   :  { %838 = vsyncpa [#allocation5 + $0x1], 1 }
 0x4b1   :  { %839 = vsyncpa [#allocation6], 1 }
 0x4b2   :  { %841 = vsyncpa [#allocation6 + $0x1], 1 }

// kernel: tpu_custom_call.1
= control target key start
LH: loop header
LB: loop body
LE: loop exit
PB: predicated region body
PF: predicated region fallthrough
CT: control target
= control target key end

     0   :  { %10 = vsyncpa [#allocation5], 0  ;;  %s1600_s0 = inlined_call_operand.vmem [shape: f32[2,16,4], index: 0, kind: input, shape index: {}]   ;;  %s1601_s1 = inlined_call_operand.hbm [shape: f32[2,384,128], index: 1, kind: input, shape index: {}]   ;;  %s1602_s2 = inlined_call_operand.vmem [shape: f32[2,1,128], index: 2, kind: input, shape index: {}]   ;;  %s1603_s3 = inlined_call_operand.vmem [shape: f32[2,1,128], index: 3, kind: input, shape index: {}]   ;;  %s1604_s4 = inlined_call_operand.vmem [shape: f32[2,1,128], index: 4, kind: input, shape index: {}]   ;;  %s1605_s5 = inlined_call_operand.hbm [shape: f32[2,16,128], index: 5, kind: output, shape index: {}]  }
   0x1   :  { %11 = vsyncpa [#allocation6], 0 }
   0x2   :  { %13 = vsyncpa [#allocation6 + $0x1], 0  ;;  %s1421_s18 = smov 0   ;;  %s1423_s19 = smov 0  }
   0x3   :  { %s1425_s20 = smov 0   ;;  %s1427_s21 = smov 0  }
   0x4 LB: > { %s1442_s22 = sadd.s32 4294967295, %s1382_s21   ;;  %s889_s23 = sadd.s32 4294967294, %s1382_s21   ;;  %s1382_s21 = sphi %s1427_s21, %s1621_s21   ;;  %s1378_s20 = sphi %s1425_s20, %s1620_s20   ;;  %s1374_s19 = sphi %s1423_s19, %s1619_s19   ;;  %s1370_s18 = sphi %s1421_s18, %s1618_s18  }
   0x5   : > { %s1446_s24 = sadd.s32 1, %s1382_s21   ;;  %s136_s25 = sadd.s32 1, %s1378_s20 }
   0x6   : > { %s133_s26 = ssub.s32 %s1382_s21, %s1446_s24  ;;  %p146_p0 = scmp.ne.s32.totalorder %s1378_s20, %s1374_s19 }
   0x7   : > { %p134_p1 = scmp.eq.s32.totalorder %s133_s26, 0  ;;  %p147_p2 = scmp.eq.s32.totalorder %s1442_s22, 1 }
   0x8   : > { %p152_p3 = scmp.ne.s32.totalorder %s1374_s19, %s1370_s18  ;;  %p153_p4 = scmp.eq.s32.totalorder %s889_s23, 1 }
   0x9   : > { %s1457_s27 = scalar_select %p134_p1, %s1378_s20, %s136_s25  }
   0xa   : > { %p1459_p5 = por %p147_p2, %p146_p0  ;;  %p1463_p6 = por %p153_p4, %p152_p3 }
   0xb   : > { %p890_p7 = scmp.ge.s32.totalorder %s1382_s21, 1  ;;  %p160_p8 = scmp.lt.s32.totalorder %s1382_s21, 3 }
   0xc   : > { %s1609_s28 = scalar_select %p1459_p5, 1, 0 }
   0xd   : > { %s1610_s29 = scalar_select %p1463_p6, 1, 0 }
   0xe   : > { %p1606_p9 = scmp.eq.s32.totalorder %s1442_s22, 0  ;;  %p1470_p10 = pnand %p890_p7, %p160_p8 }
   0xf   : > { %s1384_s6 = smov [#allocation4]   ;;  %s1288_s11 = scalar_lea.hbm %s1601_s1, 12288 }
  0x10   : > { %s1611_s30 = scalar_select %p1470_p10, 1, 0 }
  0x11   : > { %s172_s7 = sshll.u32 %s1384_s6, 4  ;;  %p1231_p11 = pneg %p1470_p10  ;;  %s173_s7 = int_to_ptr.vmem [resolvable:$true] %s172_s7 }
  0x12   : > { %p1289_p13 = scmp.ne.s32.totalorder %s1601_s1, %s1288_s11  ;;  %p1295_p3 = scmp.lt.u32.totalorder %s1288_s11, %s1601_s1 }
  0x13   : > { %p1478_p12 = pnand %p1606_p9, %p1231_p11 }
  0x15   : > { %p1290_p0 = pneg %p1478_p12 }
  0x17   : > { %p1291_p1 = pnand %p1290_p0, %p1289_p13 }
  0x19   : > { %p1292_p2 = pneg %p1291_p1 }
  0x1b   : > { %p1297_p4 = pnand %p1295_p3, %p1292_p2 }
  0x1d   : > { %1300 = shalt.err (!%p1297_p4)
}
  0x1e   : > { %s1301_s16 = scalar_lea.vmem %s173_s7, 12288  ;;  %p1309_p9 = scmp.lt.s32.totalorder %s173_s7, %s173_s7 }
  0x1f   : > { %p1302_p7 = scmp.ne.s32.totalorder %s173_s7, %s1301_s16  ;;  %p1310_p6 = scmp.lt.s32.totalorder %s1301_s16, %s1301_s16 }
  0x21   : > { %p1304_p8 = pnand %p1302_p7, %p1290_p0  ;;  %p1311_p5 = por %p1310_p6, %p1309_p9 }
  0x23   : > { %p1305_p11 = pneg %p1304_p8 }
  0x25   : > { %p1312_p10 = pnand %p1311_p5, %p1305_p11 }
  0x27   : > { %1315 = shalt.err (!%p1312_p10)
}
  0x28   : > { %s1385_s17 = smov 128   ;;  %s1386_s23 = smov 8  }
  0x29   : > { %1234 = dma.hbm_to_vmem [thread:$0]  (!%p1478_p12), %s1601_s1, 12288, %s173_s7, [#allocation5], %s1385_s17, %s1385_s17, %s1386_s23  }
  0x2a   : > { %p1613_p13 = scmp.ne.s32.totalorder %s1611_s30, 0 }
  0x2b   : > { %p1614_p1 = scmp.eq.s32.totalorder (!%p1613_p13), %s1442_s22, 0 }
  0x2c   : > { %205 = sbr.rel (%p1613_p13) target bundleno = 1184 (0x4a0), region = 40 }
  0x33   : > { %1361 = dma.done.wait (%p1614_p1), [#allocation5], 12288   ;;  %p1615_p0 = pmov %p1614_p1 }
  0x34   : > { %vm240_vm0 = vcmask 1047584   ;;  %v1387_v0 = vmov 0.0   ;;  %v287_v1 = vld [vmem:[#allocation4 + $0x80] sm:$0xff]  ;;  %v288_v2 = vld [vmem:[#allocation4 + $0x88] sm:$0xff]  ;;  %p233_p5 = scmp.lt.s32.totalorder %s1442_s22, 1  ;;  %v289_v10 = vld [vmem:[#allocation4 + $0x90] sm:$0xff] }
  0x35   : > { %1363 = vsyncadd (%p1615_p0), [#allocation5], 4294955008  ;;  %241 = vst.msk [vmem:[#allocation2 + $0x1] sm:$0xff] %vm240_vm0, %v1387_v0  ;;  %v271_v3 = vld [vmem:[#allocation4] sm:$0xff]  ;;  %v1097_v4 = vpack.c.bf16 %v288_v2, %v287_v1  ;;  %v272_v5 = vld [vmem:[#allocation4 + $0x8] sm:$0xff]  ;;  %vm245_vm1 = vcmask 31744  }
  0x36   : > { %238 = vst [vmem:[#allocation2] sm:$0x1] %v1387_v0  ;;  %239 = vst [vmem:[#allocation2 + $0x11] sm:$0x1] %v1387_v0  ;;  %v303_v6 = vld [vmem:[#allocation4 + $0x100] sm:$0xff]  ;;  %v304_v7 = vld [vmem:[#allocation4 + $0x108] sm:$0xff]  ;;  %v1099_v8 = vpack.c.bf16 %v272_v5, %v271_v3 }
  0x37   : > { %242 = vst.msk [vmem:[#allocation2 + $0x9] sm:$0xff] %vm240_vm0, %v1387_v0  ;;  %v1129_v9 = vpack.c.bf16 %v304_v7, %v303_v6  ;;  %v290_v11 = vld [vmem:[#allocation4 + $0x98] sm:$0xff]  ;;  %v273_v12 = vld [vmem:[#allocation4 + $0x10] sm:$0xff]  ;;  %1098 = vmatprep.subr.bf16.mxu0 %v1097_v4  ;;  %v291_v19 = vld [vmem:[#allocation4 + $0xa0] sm:$0xff]  ;;  %s234_s30 = scalar_select %p233_p5, %s1442_s22, 1  ;;  %vm522_vm3 = vcmask 1040384  }
  0x38   : > { %v1101_v13 = vpack.c.bf16 %v290_v11, %v289_v10  ;;  %v274_v14 = vld [vmem:[#allocation4 + $0x18] sm:$0xff]  ;;  %v305_v15 = vld [vmem:[#allocation4 + $0x110] sm:$0xff]  ;;  %1100 = vmatpush3.bf16.msra.mxu0 %v1099_v8  ;;  %v292_v20 = vld [vmem:[#allocation4 + $0xa8] sm:$0xff]  ;;  %vm532_vm4 = vcmask 1046528   ;;  %s230_s23 = sand.u32 1, %s1374_s19   ;;  %s914_s8 = sshll.u32 %s1442_s22, 8 }
  0x39   : > { %v306_v16 = vld [vmem:[#allocation4 + $0x118] sm:$0xff]  ;;  %1130 = vmatprep.subr.bf16.mxu1 %v1129_v9  ;;  %v1103_v17 = vpack.c.bf16 %v274_v14, %v273_v12  ;;  %v275_v21 = vld [vmem:[#allocation4 + $0x20] sm:$0xff]  ;;  %v1105_v22 = vpack.c.bf16 %v292_v20, %v291_v19  ;;  %v276_v23 = vld [vmem:[#allocation4 + $0x28] sm:$0xff]  ;;  %s913_s6 = sshll.u32 %s234_s30, 4  ;;  %s895_s30 = sshll.u32 %s230_s23, 4 }
  0x3a   : > { %v1133_v18 = vpack.c.bf16 %v306_v16, %v305_v15  ;;  %1102 = vmatprep.subr.bf16.mxu0 %v1101_v13  ;;  %1132 = vmatpush3.bf16.msra.mxu1 %v1129_v9  ;;  %v307_v24 = vld [vmem:[#allocation4 + $0x120] sm:$0xff]  ;;  %v308_v25 = vld [vmem:[#allocation4 + $0x128] sm:$0xff]  ;;  %v293_v27 = vld [vmem:[#allocation4 + $0xb0] sm:$0xff]  ;;  %v1107_v31 = vpack.c.bf16 %v276_v23, %v275_v21  ;;  %s237_s9 = scalar_lea.vmem %s1600_s0, %s913_s6  ;;  %s1555_s13 = scalar_lea.hbm %s1605_s5, %s914_s8 }
  0x3b   : > { %v1137_v26 = vpack.c.bf16 %v308_v25, %v307_v24  ;;  %v294_v28 = vld [vmem:[#allocation4 + $0xb8] sm:$0xff]  ;;  %v309_v29 = vld [vmem:[#allocation4 + $0x130] sm:$0xff]  ;;  %v295_v36 = vld [vmem:[#allocation4 + $0xc0] sm:$0xff]  ;;  %s1559_s14 = scalar_lea.sflag [#allocation6], %s230_s23  ;;  %p1616_p9 = scmp.ne.s32.totalorder %s1609_s28, 0 }
  0x3c   : > { %1134 = vmatprep.subr.bf16.mxu1 %v1133_v18  ;;  %v310_v30 = vld [vmem:[#allocation4 + $0x138] sm:$0xff]  ;;  %1104 = vmatpush3.bf16.msra.mxu0 %v1103_v17  ;;  %v1109_v32 = vpack.c.bf16 %v294_v28, %v293_v27  ;;  %v277_v33 = vld [vmem:[#allocation4 + $0x30] sm:$0xff]  ;;  %v296_v37 = vld [vmem:[#allocation4 + $0xc8] sm:$0xff]  ;;  %s1388_s22 = smov [#allocation7]  }
  0x3d   : > { %1106 = vmatprep.subr.bf16.mxu0 %v1105_v22  ;;  %v278_v34 = vld [vmem:[#allocation4 + $0x38] sm:$0xff]  ;;  %v1141_v35 = vpack.c.bf16 %v310_v30, %v309_v29  ;;  %v311_v38 = vld [vmem:[#allocation4 + $0x140] sm:$0xff]  ;;  %v312_v39 = vld [vmem:[#allocation4 + $0x148] sm:$0xff]  ;;  %v1113_v41 = vpack.c.bf16 %v296_v37, %v295_v36  ;;  %v248_v36 = vlaneseq  ;;  %s1320_s16 = sshll.u32 %s1388_s22, 4  ;;  %s1321_s16 = int_to_ptr.vmem [resolvable:$false] %s1320_s16 }
  0x3e   : > { %1136 = vmatpush3.bf16.msra.mxu1 %v1133_v18  ;;  %v1111_v40 = vpack.c.bf16 %v278_v34, %v277_v33  ;;  %v279_v42 = vld [vmem:[#allocation4 + $0x40] sm:$0xff]  ;;  %v280_v43 = vld [vmem:[#allocation4 + $0x48] sm:$0xff]  ;;  %v1145_v44 = vpack.c.bf16 %v312_v39, %v311_v38  ;;  %v297_v45 = vld [vmem:[#allocation4 + $0xd0] sm:$0xff]  ;;  %s1322_s17 = scalar_lea.vmem %s1321_s16, 512 }
  0x3f   : > { %1138 = vmatprep.subr.bf16.mxu1 %v1137_v26  ;;  %v298_v46 = vld [vmem:[#allocation4 + $0xd8] sm:$0xff]  ;;  %v313_v47 = vld [vmem:[#allocation4 + $0x150] sm:$0xff]  ;;  %v1115_v50 = vpack.c.bf16 %v280_v43, %v279_v42  ;;  %v244_v51 = vld [vmem:[%s237_s9 + $0x8] sm:$0xff]  ;;  %v249_v37 = vand.u32 127, %v248_v36 }
  0x40   : > { %1108 = vmatpush3.bf16.msra.mxu0 %v1107_v31  ;;  %v314_v48 = vld [vmem:[#allocation4 + $0x158] sm:$0xff]  ;;  %v1117_v52 = vpack.c.bf16 %v298_v46, %v297_v45  ;;  %v281_v53 = vld [vmem:[#allocation4 + $0x50] sm:$0xff]  ;;  %247 = vst.msk [vmem:[#allocation2 + $0x9] sm:$0xff] %vm245_vm1, %v244_v51  ;;  %v299_v56 = vld [vmem:[#allocation4 + $0xe0] sm:$0xff] }
  0x41   : > { %1110 = vmatprep.subr.bf16.mxu0 %v1109_v32  ;;  %v243_v49 = vld [vmem:[%s237_s9] sm:$0xff]  ;;  %v1149_v55 = vpack.c.bf16 %v314_v48, %v313_v47  ;;  %v300_v57 = vld [vmem:[#allocation4 + $0xe8] sm:$0xff]  ;;  %v315_v58 = vld [vmem:[#allocation4 + $0x160] sm:$0xff]  ;;  %vm250_vm2 = vcmp.lt.s32.totalorder %v249_v37, 8  ;;  %s232_s9 = scalar_lea.vmem [#allocation7], %s895_s30 }
  0x42   : > { %1140 = vmatpush3.bf16.msra.mxu1 %v1137_v26  ;;  %246 = vst.msk [vmem:[#allocation2 + $0x1] sm:$0xff] %vm245_vm1, %v243_v49  ;;  %v282_v54 = vld [vmem:[#allocation4 + $0x58] sm:$0xff]  ;;  %v316_v59 = vld [vmem:[#allocation4 + $0x168] sm:$0xff]  ;;  %v1121_v61 = vpack.c.bf16 %v300_v57, %v299_v56  ;;  %v283_v62 = vld [vmem:[#allocation4 + $0x60] sm:$0xff]  ;;  %s815_s10 = sshll.u32 %s232_s9, 4  ;;  %s1557_s10 = int_to_ptr.vmem [resolvable:$true] %s815_s10 }
  0x43   : > { %1142 = vmatprep.subr.bf16.mxu1 %v1141_v35  ;;  %v1119_v60 = vpack.c.bf16 %v282_v54, %v281_v53  ;;  %v284_v63 = vld [vmem:[#allocation4 + $0x68] sm:$0xff]  ;;  %v1153_v1 = vpack.c.bf16 %v316_v59, %v315_v58  ;;  %v301_v2 = vld [vmem:[#allocation4 + $0xf0] sm:$0xff]  ;;  %v302_v3 = vld [vmem:[#allocation4 + $0xf8] sm:$0xff]  ;;  %s1316_s15 = scalar_lea.vmem %s1557_s10, 256  ;;  %p1323_p2 = scmp.lt.s32.totalorder %s1557_s10, %s1321_s16 }
  0x44   : > { %1112 = vmatpush3.bf16.msra.mxu0 %v1111_v40  ;;  %v317_v4 = vld [vmem:[#allocation4 + $0x170] sm:$0xff]  ;;  %v318_v6 = vld [vmem:[#allocation4 + $0x178] sm:$0xff]  ;;  %v1123_v8 = vpack.c.bf16 %v284_v63, %v283_v62  ;;  %v1125_v11 = vpack.c.bf16 %v302_v3, %v301_v2  ;;  %v563_v33 = vld [vmem:[#allocation4 + $0x200] sm:$0xff]  ;;  %v1521_v40 = vsel %vm250_vm2, 1.0, %v1387_v0  ;;  %p1317_p6 = scmp.ne.s32.totalorder %s1557_s10, %s1316_s15  ;;  %p1324_p3 = scmp.lt.s32.totalorder %s1322_s17, %s1316_s15 }
  0x45   : > { %1114 = vmatprep.subr.bf16.mxu0 %v1113_v41  ;;  %v285_v12 = vld [vmem:[#allocation4 + $0x70] sm:$0xff]  ;;  %v286_v13 = vld [vmem:[#allocation4 + $0x78] sm:$0xff]  ;;  %v1157_v14 = vpack.c.bf16 %v318_v6, %v317_v4  ;;  %v564_v34 = vld [vmem:[#allocation4 + $0x208] sm:$0xff] }
  0x46   : > { %1144 = vmatpush3.bf16.msra.mxu1 %v1141_v35  ;;  %v1127_v15 = vpack.c.bf16 %v286_v13, %v285_v12  ;;  %v899_v21 = vld [vmem:[%s1602_s2] ss:$0 sm:$0xff]  ;;  %v1161_v35 = vpack.c.bf16 %v564_v34, %v563_v33  ;;  %v547_v49 = vld [vmem:[#allocation4 + $0x180] sm:$0xff]  ;;  %v565_v51 = vld [vmem:[#allocation4 + $0x210] sm:$0xff]  ;;  %p1318_p10 = pnand %p1317_p6, %p1616_p9  ;;  %p1325_p4 = por %p1324_p3, %p1323_p2 }
  0x47   : > { %1146 = vmatprep.subr.bf16.mxu1 %v1145_v44  ;;  %v262_v10 = vld [vmem:[#allocation2 + $0xa] sm:$0xff]  ;;  %v550_v56 = vld [vmem:[#allocation4 + $0x198] sm:$0xff]  ;;  %v581_v62 = vld [vmem:[#allocation4 + $0x290] sm:$0xff] }
  0x48   : > { %1116 = vmatpush3.bf16.msra.mxu0 %v1115_v50  ;;  %264 = vst [vmem:[#allocation3 + $0x28] sm:$0xff] %v262_v10  ;;  %v258_v16 = vld [vmem:[#allocation2 + $0x9] sm:$0xff]  ;;  %v582_v3 = vld [vmem:[#allocation4 + $0x298] sm:$0xff]  ;;  %v569_v6 = vld [vmem:[#allocation4 + $0x230] sm:$0xff]  ;;  %p1319_p12 = pneg %p1318_p10 }
  0x49   : > { %1118 = vmatprep.subr.bf16.mxu0 %v1117_v52  ;;  %v257_v5 = vld [vmem:[#allocation2 + $0x1] sm:$0xff]  ;;  %v548_v50 = vld [vmem:[#allocation4 + $0x188] sm:$0xff] }
  0x4a   : > { %1148 = vmatpush3.bf16.msra.mxu1 %v1145_v44  ;;  %v253_v7 = vld [vmem:[#allocation2] sm:$0xff]  ;;  %390 = vmatprep.mubr.f32.mxu0 %v257_v5  ;;  %v254_v17 = vld [vmem:[#allocation2 + $0x8] sm:$0xff]  ;;  %v1163_v0 = vpack.c.bf16 %v548_v50, %v547_v49  ;;  %v580_v57 = vld [vmem:[#allocation4 + $0x288] sm:$0xff]  ;;  %v1197_v5 = vpack.c.bf16 %v582_v3, %v581_v62  ;;  %p1326_p7 = pnand %p1325_p4, %p1319_p12 }
  0x4b   : > { %1150 = vmatprep.subr.bf16.mxu1 %v1149_v55  ;;  %255 = vst [vmem:[#allocation3] sm:$0xff] %v253_v7  ;;  %v261_v9 = vld [vmem:[#allocation2 + $0x2] sm:$0xff]  ;;  %v552_v2 = vld [vmem:[#allocation4 + $0x1a8] sm:$0xff]  ;;  %v561_v49 = vld [vmem:[#allocation4 + $0x1f0] sm:$0xff] }
  0x4c   : > { %1120 = vmatpush3.bf16.msra.mxu0 %v1119_v60  ;;  %1059 = vmatprep.mubr.f32.mxu1 %v261_v9  ;;  %v566_v52 = vld [vmem:[#allocation4 + $0x218] sm:$0xff]  ;;  %v579_v53 = vld [vmem:[#allocation4 + $0x280] sm:$0xff]  ;;  %v584_v12 = vld [vmem:[#allocation4 + $0x2a8] sm:$0xff] }
  0x4d   : > { %1122 = vmatprep.subr.bf16.mxu0 %v1121_v61  ;;  %v1165_v54 = vpack.c.bf16 %v566_v52, %v565_v51  ;;  %v1193_v59 = vpack.c.bf16 %v580_v57, %v579_v53  ;;  %v567_v60 = vld [vmem:[#allocation4 + $0x220] sm:$0xff]  ;;  %v568_v61 = vld [vmem:[#allocation4 + $0x228] sm:$0xff]  ;;  %v562_v50 = vld [vmem:[#allocation4 + $0x1f8] sm:$0xff] }
  0x4e   : > { %1152 = vmatpush3.bf16.msra.mxu1 %v1149_v55  ;;  %v549_v55 = vld [vmem:[#allocation4 + $0x190] sm:$0xff]  ;;  %v1169_v63 = vpack.c.bf16 %v568_v61, %v567_v60  ;;  %v575_v33 = vld [vmem:[#allocation4 + $0x260] sm:$0xff]  ;;  %v576_v34 = vld [vmem:[#allocation4 + $0x268] sm:$0xff]  ;;  %v1191_v51 = vpack.c.bf16 %v562_v50, %v561_v49 }
  0x4f   : > { %1154 = vmatprep.subr.bf16.mxu1 %v1153_v1  ;;  %v1167_v58 = vpack.c.bf16 %v550_v56, %v549_v55  ;;  %v1185_v36 = vpack.c.bf16 %v576_v34, %v575_v33  ;;  %v559_v37 = vld [vmem:[#allocation4 + $0x1e0] sm:$0xff]  ;;  %v593_v53 = vld [vmem:[#allocation4 + $0x2f0] sm:$0xff]  ;;  %v905_v50 = vld [vmem:[%s1603_s3 + $0x1] ss:$0 sm:$0xff] }
  0x50   : > { %1124 = vmatpush3.bf16.msra.mxu0 %v1123_v8  ;;  %v583_v8 = vld [vmem:[#allocation4 + $0x2a0] sm:$0xff] }
  0x51   : > { %1126 = vmatprep.subr.bf16.mxu0 %v1125_v11  ;;  %v554_v11 = vld [vmem:[#allocation4 + $0x1b8] sm:$0xff] }
  0x52   : > { %1156 = vmatpush3.bf16.msra.mxu1 %v1153_v1  ;;  %v551_v1 = vld [vmem:[#allocation4 + $0x1a0] sm:$0xff] }
  0x53   : > { %1158 = vmatprep.subr.bf16.mxu1 %v1157_v14  ;;  %v1171_v4 = vpack.c.bf16 %v552_v2, %v551_v1  ;;  %v901_v2 = vld [vmem:[%s1604_s4] ss:$0 sm:$0xff] }
  0x54   : > { %1128 = vmatpush3.bf16.msra.mxu0 %v1127_v15  ;;  %v571_v15 = vld [vmem:[#allocation4 + $0x240] sm:$0xff] }
  0x55   : > { %1162 = vmatprep.subr.bf16.mxu0 %v1161_v35  ;;  %v589_v35 = vld [vmem:[#allocation4 + $0x2d0] sm:$0xff] }
  0x56   : > { %1160 = vmatpush3.bf16.msra.mxu1 %v1157_v14  ;;  %v1201_v14 = vpack.c.bf16 %v584_v12, %v583_v8 }
  0x57   : > { %391 = vmatmul.mubr.f32.vlgmr.msra.gmra.mrb[0].mxu0 %v253_v7  ;;  %1194 = vmatprep.subr.bf16.mxu1 %v1193_v59  ;;  %v570_v7 = vld [vmem:[#allocation4 + $0x238] sm:$0xff] }
  0x58   : > { %395 = vmatprep.mubr.f32.mxu0 %v258_v16  ;;  %1164 = vmatpush3.bf16.msra.mxu0 %v1163_v0  ;;  %v1173_v9 = vpack.c.bf16 %v570_v7, %v569_v6  ;;  %v572_v16 = vld [vmem:[#allocation4 + $0x248] sm:$0xff] }
  0x59   : > { %1060 = vmatmul.mubr.f32.vlgmr.msra.gmra.mrb[0].mxu1 %v262_v10  ;;  %1166 = vmatprep.subr.bf16.mxu0 %v1165_v54  ;;  %v553_v10 = vld [vmem:[#allocation4 + $0x1b0] sm:$0xff]  ;;  %v592_v0 = vld [vmem:[#allocation4 + $0x2e8] sm:$0xff]  ;;  %v594_v54 = vld [vmem:[#allocation4 + $0x2f8] sm:$0xff] }
  0x5a   : > { %1196 = vmatpush3.bf16.msra.mxu1 %v1193_v59  ;;  %v1175_v13 = vpack.c.bf16 %v554_v11, %v553_v10  ;;  %v1221_v55 = vpack.c.bf16 %v594_v54, %v593_v53 }
  0x5b   : > { %396 = vmatmul.mubr.f32.gmra.mrb[2].mxu0 %v254_v17  ;;  %1198 = vmatprep.subr.bf16.mxu1 %v1197_v5  ;;  %v585_v17 = vld [vmem:[#allocation4 + $0x2b0] sm:$0xff] }
  0x5c   : > { %1168 = vmatpush3.bf16.msra.mxu0 %v1167_v58 }
  0x5d   : > { %1170 = vmatprep.subr.bf16.mxu0 %v1169_v63  ;;  %v900_v63 = vld [vmem:[%s1603_s3] ss:$0 sm:$0xff] }
  0x5e   : > { %1200 = vmatpush3.bf16.msra.mxu1 %v1197_v5 }
  0x5f   : > { %1202 = vmatprep.subr.bf16.mxu1 %v1201_v14 }
  0x60   : > { %1172 = vmatpush3.bf16.msra.mxu0 %v1171_v4 }
  0x61   : > { %1174 = vmatprep.subr.bf16.mxu0 %v1173_v9 }
  0x62   : > { %1204 = vmatpush3.bf16.msra.mxu1 %v1201_v14 }
  0x64   : > { %1176 = vmatpush3.bf16.msra.mxu0 %v1175_v13 }
 0x12a   : > { %v947_v18 = vpop.f32.mrb[0].mxu0 }
 0x12b   : > { %v948_v19 = vpop.f32.mrb[1].mxu0 }
 0x12c   : > { %v1061_v20 = vpop.f32.mrb[0].mxu1  ;;  %v949_v22 = vadd.f32 %v948_v19, %v947_v18  ;;  %v1177_v18 = vpack.c.bf16 %v572_v16, %v571_v15  ;;  %v555_v19 = vld [vmem:[#allocation4 + $0x1c0] sm:$0xff] }
 0x12d   : > { %v467_v23 = vpop.f32.mrb[1].mxu1 }
 0x12e   : > { %v950_v24 = vpop.f32.mrb[2].mxu0  ;;  %v393_v25 = vadd.f32 %v949_v22, %v899_v21  ;;  %1178 = vmatprep.subr.bf16.mxu0 %v1177_v18 }
 0x12f   : > { %v951_v26 = vpop.f32.mrb[3].mxu0 }
 0x130   : > { %v468_v27 = vadd.f32 %v467_v23, %v393_v25  ;;  %v952_v28 = vadd.f32 %v951_v26, %v950_v24  ;;  %v573_v24 = vld [vmem:[#allocation4 + $0x250] sm:$0xff]  ;;  %v574_v25 = vld [vmem:[#allocation4 + $0x258] sm:$0xff]  ;;  %v587_v26 = vld [vmem:[#allocation4 + $0x2c0] sm:$0xff] }
 0x132   : > { %v476_v29 = vmax.f32 %v468_v27, 0.0  ;;  %v398_v30 = vadd.f32 %v952_v28, %v899_v21  ;;  %v586_v21 = vld [vmem:[#allocation4 + $0x2b8] sm:$0xff]  ;;  %v1181_v27 = vpack.c.bf16 %v574_v25, %v573_v24  ;;  %v557_v28 = vld [vmem:[#allocation4 + $0x1d0] sm:$0xff] }
 0x133   : > { %v1205_v23 = vpack.c.bf16 %v586_v21, %v585_v17  ;;  %v903_v17 = vld [vmem:[%s1602_s2 + $0x1] ss:$0 sm:$0xff] }
 0x134   : > { %478 = vadd.xlane.f32.xlu0 %v476_v29  ;;  %v473_v31 = vadd.f32 %v1061_v20, %v398_v30  ;;  %v556_v20 = vld [vmem:[#allocation4 + $0x1c8] sm:$0xff] }
 0x135   : > { %v1179_v22 = vpack.c.bf16 %v556_v20, %v555_v19  ;;  %1206 = vmatprep.subr.bf16.mxu1 %v1205_v23  ;;  %v588_v30 = vld [vmem:[#allocation4 + $0x2c8] sm:$0xff] }
 0x136   : > { %v477_v32 = vmax.f32 %v473_v31, 0.0  ;;  %1208 = vmatpush3.bf16.msra.mxu1 %v1205_v23 }
 0x137   : > { %1180 = vmatpush3.bf16.msra.mxu0 %v1179_v22 }
 0x138   : > { %480 = vadd.xlane.f32.xlu0 %v477_v32  ;;  %1182 = vmatprep.subr.bf16.mxu0 %v1181_v27 }
 0x1c1   : > { %v479_v38 = vpop.xlane.xlu0 %478 }
 0x1c2   : > { %v482_v39 = vmul.f32 0.125, %v479_v38  ;;  %v560_v38 = vld [vmem:[#allocation4 + $0x1e8] sm:$0xff] }
 0x1c4   : > { %v1523_v41 = vsub.f32 %v476_v29, %v482_v39  ;;  %v558_v29 = vld [vmem:[#allocation4 + $0x1d8] sm:$0xff] }
 0x1c5   : > { %v481_v42 = vpop.xlane.xlu0 %480  ;;  %v1183_v31 = vpack.c.bf16 %v558_v29, %v557_v28  ;;  %v590_v39 = vld [vmem:[#allocation4 + $0x2d8] sm:$0xff] }
 0x1c6   : > { %v483_v43 = vmul.f32 0.125, %v481_v42  ;;  %v486_v44 = vmul.f32 %v1521_v40, %v1523_v41  ;;  %v1187_v42 = vpack.c.bf16 %v560_v38, %v559_v37 }
 0x1c7   : > { %1184 = vmatpush3.bf16.msra.mxu0 %v1183_v31 }
 0x1c8   : > { %v1527_v45 = vsub.f32 %v477_v32, %v483_v43  ;;  %v488_v46 = vmul.f32 %v486_v44, %v486_v44  ;;  %v1209_v32 = vpack.c.bf16 %v588_v30, %v587_v26  ;;  %v1213_v43 = vpack.c.bf16 %v590_v39, %v589_v35  ;;  %1186 = vmatprep.subr.bf16.mxu0 %v1185_v36  ;;  %v577_v44 = vld [vmem:[#allocation4 + $0x270] sm:$0xff] }
 0x1ca   : > { %490 = vadd.xlane.f32.xlu1 %v488_v46  ;;  %v487_v47 = vmul.f32 %v1521_v40, %v1527_v45  ;;  %1210 = vmatprep.subr.bf16.mxu1 %v1209_v32  ;;  %v578_v46 = vld [vmem:[#allocation4 + $0x278] sm:$0xff] }
 0x1cb   : > { %1212 = vmatpush3.bf16.msra.mxu1 %v1209_v32  ;;  %1188 = vmatpush3.bf16.msra.mxu0 %v1187_v42 }
 0x1cc   : > { %v489_v48 = vmul.f32 %v487_v47, %v487_v47  ;;  %1214 = vmatprep.subr.bf16.mxu1 %v1213_v43  ;;  %v591_v47 = vld [vmem:[#allocation4 + $0x2e0] sm:$0xff] }
 0x1cd   : > { %v1217_v52 = vpack.c.bf16 %v592_v0, %v591_v47 }
 0x1ce   : > { %492 = vadd.xlane.f32.xlu1 %v489_v48  ;;  %v1189_v48 = vpack.c.bf16 %v578_v46, %v577_v44 }
 0x1cf   : > { %1216 = vmatpush3.bf16.msra.mxu1 %v1213_v43 }
 0x1d0   : > { %1190 = vmatprep.subr.bf16.mxu0 %v1189_v48  ;;  %1218 = vmatprep.subr.bf16.mxu1 %v1217_v52 }
 0x1d1   : > { %1192 = vmatpush3.bf16.msra.mxu0 %v1191_v51 }
 0x1d3   : > { %1220 = vmatpush3.bf16.msra.mxu1 %v1217_v52 }
 0x1d4   : > { %1222 = vmatprep.subr.bf16.mxu1 %v1221_v55 }
 0x1d7   : > { %1224 = vmatpush3.bf16.msra.mxu1 %v1221_v55 }
 0x257   : > { %v491_v56 = vpop.xlane.xlu1 %490 }
 0x258   : > { %v494_v57 = vmul.f32 0.125, %v491_v56 }
 0x25a   : > { %v496_v58 = vadd.f32 1e-05, %v494_v57 }
 0x25b   : > { %v493_v59 = vpop.xlane.xlu1 %492 }
 0x25c   : > { %1280 = vrsqrt.f32 %v496_v58  ;;  %v495_v60 = vmul.f32 0.125, %v493_v59 }
 0x25e   : > { %v497_v61 = vadd.f32 1e-05, %v495_v60 }
 0x260   : > { %1282 = vrsqrt.f32 %v497_v61 }
 0x266   : > { %v1281_v62 = vpop.eup %1280 }
 0x267   : > { %v500_v1 = vmul.f32 %v1281_v62, %v1523_v41 }
 0x269   : > { %v509_v3 = vmul.f32 %v900_v63, %v500_v1 }
 0x26a   : > { %v1283_v4 = vpop.eup %1282 }
 0x26b   : > { %v518_v5 = vadd.f32 %v901_v2, %v509_v3  ;;  %v501_v6 = vmul.f32 %v1283_v4, %v1527_v45 }
 0x26d   : > { %v523_v7 = vrot.slane %v518_v5, 7  ;;  %v510_v8 = vmul.f32 %v900_v63, %v501_v6  ;;  %667 = vmatprep.mubr.f32.mxu0 %v518_v5  ;;  %v533_v10 = vrot.slane %v518_v5, 1 }
 0x26f   : > { %528 = vst [vmem:[#allocation3] sm:$0xfe] %v523_v7  ;;  %v519_v9 = vadd.f32 %v901_v2, %v510_v8 }
 0x271   : > { %v524_v11 = vrot.slane %v519_v9, 7  ;;  %v534_v12 = vrot.slane %v519_v9, 1 }
 0x273   : > { %v525_v41 = vsel %vm522_vm3, %v523_v7, %v524_v11  ;;  %v535_v13 = vsel %vm532_vm4, %v533_v10, %v534_v12  ;;  %539 = vst [vmem:[#allocation3 + $0x28] sm:$0x7f] %v534_v12 }
 0x274   : > { %1094 = vmatprep.mubr.f32.mxu1 %v535_v13 }
 0x276   : > { %v540_v14 = vld [vmem:[#allocation3] sm:$0xff] }
 0x277   : > { %668 = vmatmul.mubr.f32.vlgmr.msra.gmra.mrb[4].mxu0 %v540_v14 }
 0x278   : > { %672 = vmatprep.mubr.f32.mxu0 %v519_v9 }
 0x27a   : > { %v545_v15 = vld [vmem:[#allocation3 + $0x28] sm:$0xff] }
 0x27b   : > { %673 = vmatmul.mubr.f32.gmra.mrb[6].mxu0 %v525_v41  ;;  %1095 = vmatmul.mubr.f32.vlgmr.msra.gmra.mrb[2].mxu1 %v545_v15 }
 0x34a   : > { %v1003_v45 = vpop.f32.mrb[4].mxu0 }
 0x34b   : > { %v1004_v16 = vpop.f32.mrb[5].mxu0 }
 0x34c   : > { %v1005_v18 = vadd.f32 %v1004_v16, %v1003_v45 }
 0x34e   : > { %v1006_v19 = vpop.f32.mrb[6].mxu0  ;;  %v1096_v20 = vpop.f32.mrb[2].mxu1  ;;  %v670_v21 = vadd.f32 %v1005_v18, %v903_v17 }
 0x34f   : > { %v1007_v22 = vpop.f32.mrb[7].mxu0  ;;  %v744_v23 = vpop.f32.mrb[3].mxu1 }
 0x350   : > { %v1008_v24 = vadd.f32 %v1007_v22, %v1006_v19  ;;  %v745_v25 = vadd.f32 %v744_v23, %v670_v21 }
 0x352   : > { %v675_v26 = vadd.f32 %v1008_v24, %v903_v17  ;;  %v753_v27 = vmax.f32 %v745_v25, 0.0 }
 0x354   : > { %v750_v28 = vadd.f32 %v1096_v20, %v675_v26  ;;  %755 = vadd.xlane.f32.xlu0 %v753_v27 }
 0x356   : > { %v754_v29 = vmax.f32 %v750_v28, 0.0 }
 0x358   : > { %757 = vadd.xlane.f32.xlu1 %v754_v29 }
 0x3e1   : > { %v756_v30 = vpop.xlane.xlu0 %755 }
 0x3e2   : > { %v759_v31 = vmul.f32 0.125, %v756_v30 }
 0x3e4   : > { %v761_v32 = vsub.f32 %v753_v27, %v759_v31 }
 0x3e5   : > { %v758_v33 = vpop.xlane.xlu1 %757 }
 0x3e6   : > { %v760_v34 = vmul.f32 0.125, %v758_v33  ;;  %v763_v35 = vmul.f32 %v1521_v40, %v761_v32 }
 0x3e8   : > { %v762_v36 = vsub.f32 %v754_v29, %v760_v34  ;;  %v765_v37 = vmul.f32 %v763_v35, %v763_v35 }
 0x3ea   : > { %767 = vadd.xlane.f32.xlu0 %v765_v37  ;;  %v764_v38 = vmul.f32 %v1521_v40, %v762_v36  ;;  %v907_v40 = vld [vmem:[%s1604_s4 + $0x1] ss:$0 sm:$0xff] }
 0x3ec   : > { %v766_v39 = vmul.f32 %v764_v38, %v764_v38 }
 0x3ee   : > { %769 = vadd.xlane.f32.xlu1 %v766_v39 }
 0x477   : > { %v768_v42 = vpop.xlane.xlu0 %767 }
 0x478   : > { %v771_v43 = vmul.f32 0.125, %v768_v42 }
 0x47a   : > { %v773_v44 = vadd.f32 1e-05, %v771_v43 }
 0x47b   : > { %v770_v46 = vpop.xlane.xlu1 %769 }
 0x47c   : > { %1284 = vrsqrt.f32 %v773_v44  ;;  %v772_v47 = vmul.f32 0.125, %v770_v46 }
 0x47e   : > { %v774_v48 = vadd.f32 1e-05, %v772_v47 }
 0x480   : > { %1286 = vrsqrt.f32 %v774_v48 }
 0x486   : > { %v1285_v49 = vpop.eup %1284 }
 0x487   : > { %v777_v0 = vmul.f32 %v1285_v49, %v761_v32 }
 0x489   : > { %v787_v51 = vmul.f32 %v905_v50, %v777_v0 }
 0x48a   : > { %v1287_v52 = vpop.eup %1286 }
 0x48b   : > { %v797_v53 = vadd.f32 %v907_v40, %v787_v51  ;;  %v778_v54 = vmul.f32 %v1287_v52, %v762_v36 }
 0x48d   : > { %v788_v55 = vmul.f32 %v905_v50, %v778_v54  ;;  %799 = vst [vmem:[%s232_s9] sm:$0xff] %v797_v53 }
 0x48f   : > { %v798_v56 = vadd.f32 %v907_v40, %v788_v55 }
 0x491   : > { %800 = vst [vmem:[%s232_s9 + $0x8] sm:$0xff] %v798_v56 }
 0x492   : > { %1329 = shalt.err (!%p1326_p7)
}
 0x493   : > { %s1330_s23 = scalar_lea.hbm %s1555_s13, 256  ;;  %s1334_s30 = scalar_lea.hbm %s1605_s5, 512 }
 0x494   : > { %p1331_p8 = scmp.ne.s32.totalorder %s1555_s13, %s1330_s23  ;;  %p1335_p1 = scmp.lt.u32.totalorder %s1555_s13, %s1605_s5 }
 0x495   : > { %p1336_p0 = scmp.lt.u32.totalorder %s1334_s30, %s1330_s23  ;;  %p1338_p6 = scmp.lt.u32.totalorder %s1330_s23, %s1555_s13 }
 0x496   : > { %p1332_p11 = pnand %p1331_p8, %p1616_p9 }
 0x497   : > { %p1337_p5 = por %p1336_p0, %p1335_p1 }
 0x498   : > { %p1333_p13 = pneg %p1332_p11 }
 0x499   : > { %p1339_p10 = por %p1338_p6, %p1337_p5 }
 0x49b   : > { %p1340_p12 = pnand %p1339_p10, %p1333_p13 }
 0x49d   : > { %1343 = shalt.err (!%p1340_p12)
}
 0x49e   : > { %s1389_s8 = smov 128   ;;  %s1390_s9 = smov 8  }
 0x49f   : > { %1229 = dma.vmem_to_hbm [thread:$0]  (%p1616_p9), %s1557_s10, 256, %s1555_s13, %s1559_s14, %s1389_s8, %s1389_s8, %s1390_s9  }
 0x4a0 PF: > { %p1241_p2 = scmp.ge.s32.totalorder %s1382_s21, 2  ;;  %s830_s11 = sand.u32 1, %s1370_s18  }
 0x4a1   : > { %p1617_p3 = scmp.ne.s32.totalorder %s1610_s29, 0  ;;  %s831_s12 = scalar_lea.sflag [#allocation6], %s830_s11 }
 0x4a3   : > { %p1236_p4 = pnand %p1241_p2, %p1617_p3 }
 0x4a5   : > { %1365 = dma.done.wait (!%p1236_p4), %s831_s12, 256  }
 0x4a6   : > { %1367 = vsyncadd (!%p1236_p4), %s831_s12, 4294967040  ;;  %p16_p7 = scmp.ge.s32.totalorder %s1446_s24, 4   ;;  %s1618_s18 = smov %s1374_s19 }
 0x4a7   : > { %s1619_s19 = smov %s1378_s20  ;;  %s1620_s20 = smov %s1457_s27 }
 0x4a8   : > { %s1621_s21 = smov %s1446_s24  ;;  %18 = sbr.rel (!%p16_p7) target bundleno = 4 (0x4), region = 84 }
 0x4af   :  { %836 = vsyncpa [#allocation5], 1 }
 0x4b0   :  { %838 = vsyncpa [#allocation5 + $0x1], 1 }
 0x4b1   :  { %839 = vsyncpa [#allocation6], 1 }
 0x4b2   :  { %841 = vsyncpa [#allocation6 + $0x1], 1 }

</bundles_post_ra>
